<compile_context>
chip_gen: v5e
topology: v5e:2x2
jax: 0.10.0
libtpu: 0.0.40
codegen_flags: <defaults>
</compile_context>

<pallas_src>
import warnings
from functools import partial

import jax
import jax.numpy as jnp
from jax.experimental import pallas as pl
from jax.experimental.pallas import tpu as pltpu

KSIZE = 8                      # kernel_size = stride = 8 along each of D, H, W
OUT_CH = 3                     # output channels
N_COLS = OUT_CH * KSIZE ** 3   # 1536 flattened output columns (multiple of 128)
_COLS_PER_CO = KSIZE ** 3      # 512

# Errors that indicate "this kernel variant can't be built here" -> fall back.
_FALLBACK_ERRORS = (pltpu.LoweringException, NotImplementedError, ValueError, RuntimeError)

_PATH_CACHE = {}               # (shape, dtype, cfg) -> fused path usable?
_VMEM_LIMIT_CACHE = [None]


def _round_up(v, k):
    return ((v + k - 1) // k) * k


def _vmem_limit():
    """Per-generation scoped-VMEM budget: 64 MiB on v5e/v6e (128 MiB phys), 32 MiB on v7x."""
    if _VMEM_LIMIT_CACHE[0] is None:
        limit = 32 * 1024 * 1024
        try:
            cap = int(pltpu.get_tpu_info().vmem_capacity_bytes)
            limit = max(32 * 1024 * 1024, min(cap // 2, 64 * 1024 * 1024))
        except Exception:  # CPU / older runtime: stay at the conservative 32 MiB
            pass
        _VMEM_LIMIT_CACHE[0] = limit
    return _VMEM_LIMIT_CACHE[0]


# ---------------------------------------------------------------------------
# Kernels
# ---------------------------------------------------------------------------

def _matmul_bias_kernel(x_ref, w_ref, b_ref, o_ref):
    # x_ref: (tm, Cin)  w_ref: (Cin, 1536)  b_ref: (1, 1536)  o_ref: (tm, 1536)
    acc = jnp.dot(x_ref[...], w_ref[...], preferred_element_type=jnp.float32)
    o_ref[...] = (acc + b_ref[...]).astype(o_ref.dtype)


def _fused_layout_kernel(x_ref, w_ref, b_ref, o_ref):
    # x_ref: (rows, Cin) with rows = td*th*W voxels (d-range x h-range x full W sweep)
    # w_ref: (Cin, 1536)   columns ordered (co, kd, kh, kw)
    # b_ref: (1, 1536)
    # o_ref: (3, td, 8, th, 8*W*8) == (co, d_local, kd, h_local, (kh,w,kw)) slab;
    #        last dim is lane-dense (multiple of 128 for W>=2).
    td, th = o_ref.shape[1], o_ref.shape[3]
    lane = o_ref.shape[4]
    w_sz = lane // (KSIZE * KSIZE)

    acc = jnp.dot(x_ref[...], w_ref[...], preferred_element_type=jnp.float32)
    acc = acc + b_ref[...]

    # Shuffle split per output channel (512-column slabs) to bound XLU work / temps.
    for co in range(OUT_CH):
        slab = acc[:, co * _COLS_PER_CO:(co + 1) * _COLS_PER_CO]     # (rows, 512)
        t = slab.reshape(td, th, w_sz, KSIZE, KSIZE, KSIZE)          # (dl,h,w,kd,kh,kw)
        t = jnp.transpose(t, (0, 3, 1, 4, 2, 5))                     # (dl,kd,h,kh,w,kw)
        o_ref[co] = t.reshape(td, KSIZE, th, lane).astype(o_ref.dtype)


# ---------------------------------------------------------------------------
# VMEM-aware tile selection
# ---------------------------------------------------------------------------

def _pick_fused_tile(d, h, w, cin, vmem_limit):
    """Return (td, th) row-tile for the fused path (rows = td*th*W), or None."""
    budget = int(vmem_limit * 0.75)
    fixed = 2 * cin * N_COLS * 4 + 2 * N_COLS * 4        # 2x weight buffers + bias
    per_row = 4 * (2 * cin + 2 * N_COLS + 2 * N_COLS)    # 2x in, 2x out, shuffle temps
    rows_budget = (budget - fixed) // per_row
    rows_budget = min(rows_budget, 512)                   # >=3 MB stores/step; bounds temps
    if rows_budget < 1:
        return None

    hw = h * w
    total = d * hw
    if hw <= rows_budget:
        # Fold D into the tile (th == H).
        for td in range(min(d, rows_budget // hw), 0, -1):
            if d % td:
                continue
            rows = td * hw
            if rows % 8 == 0 or rows == total:            # input block second-minor rule
                return (td, h)
        return None
    # Tile H only; th must divide H and be a multiple of 8 (output block second-minor rule).
    for th in range(min(h, rows_budget // max(w, 1)), 0, -1):
        if h % th or th % 8:
            continue
        if th * w <= rows_budget:
            return (1, th)
    return None


def _pick_tm(m, cin, vmem_limit):
    """Row-tile for the plain (matmul + XLA shuffle) path."""
    budget = int(vmem_limit * 0.75)
    fixed = 2 * cin * N_COLS * 4 + 2 * N_COLS * 4
    per_row = 4 * (2 * cin + 2 * N_COLS)
    cap = (budget - fixed) // per_row
    cap = max(8, min(cap, 2048))
    cap = (cap // 8) * 8
    if m <= cap:
        return max(8, _round_up(m, 8))
    best_tm, best_pad = cap, None
    for tm in (cap, max(8, (cap // 2 // 8) * 8), max(8, (cap // 4 // 8) * 8)):
        pad = _round_up(m, tm) - m
        if pad * 8 <= m:                                  # <=12.5% padding: take big tile
            return tm
        if best_pad is None or pad < best_pad:
            best_tm, best_pad = tm, pad
    return best_tm


# ---------------------------------------------------------------------------
# Wrappers
# ---------------------------------------------------------------------------

@partial(jax.jit, static_argnames=("td", "th"))
def _decoder_fused(x, weight, bias, *, td, th):
    """Fused-layout path: kernel writes the final (lane-dense, contiguous) layout once."""
    n, cin, d, h, w_sz = x.shape
    rows = td * th * w_sz
    hb = h // th
    nblk = (d // td) * hb
    lane = KSIZE * w_sz * KSIZE
    m = n * d * h * w_sz

    # Glue (cheap: input is ~1536/Cin x smaller than the output).
    x3 = jnp.transpose(x, (0, 2, 3, 4, 1)).reshape(n, d * h * w_sz, cin)
    w_flat = weight.reshape(cin, N_COLS)                    # columns = (co, kd, kh, kw)
    b_flat = jnp.repeat(bias, KSIZE ** 3).reshape(1, N_COLS)

    out6 = pl.pallas_call(
        _fused_layout_kernel,
        out_shape=jax.ShapeDtypeStruct((n, OUT_CH, d, KSIZE, h, lane), jnp.float32),
        grid_spec=pltpu.PrefetchScalarGridSpec(
            num_scalar_prefetch=0,
            grid=(n, nblk),                                 # flattened (d, h) blocks
            in_specs=[
                pl.BlockSpec((None, rows, cin), lambda i, j: (i, j, 0)),
                pl.BlockSpec((cin, N_COLS), lambda i, j: (0, 0)),
                pl.BlockSpec((1, N_COLS), lambda i, j: (0, 0)),
            ],
            out_specs=pl.BlockSpec(
                (None, OUT_CH, td, KSIZE, th, lane),
                lambda i, j: (i, 0, j // hb, 0, j % hb, 0)),
        ),
        compiler_params=pltpu.CompilerParams(
            dimension_semantics=("parallel", "parallel"),
            vmem_limit_bytes=_vmem_limit()),
        cost_estimate=pl.CostEstimate(
            flops=2 * m * cin * N_COLS,
            transcendentals=0,
            bytes_accessed=4 * (m * (cin + N_COLS) + cin * N_COLS)),
    )(x3, w_flat, b_flat)

    # Contiguous reshape -> no data movement.
    return out6.reshape(n, OUT_CH, d * KSIZE, h * KSIZE, w_sz * KSIZE)


@jax.jit
def _decoder_plain(x, weight, bias):
    """Fallback path (2x HBM-traffic penalty): matmul kernel + XLA layout shuffle."""
    n, cin, d, h, w_sz = x.shape
    m = n * d * h * w_sz

    x_flat = jnp.transpose(x, (0, 2, 3, 4, 1)).reshape(m, cin)
    w_flat = weight.reshape(cin, N_COLS)
    b_flat = jnp.repeat(bias, KSIZE ** 3).reshape(1, N_COLS)

    tm = _pick_tm(m, cin, _vmem_limit())
    mp = _round_up(m, tm)                                   # pad rows instead of tiny tiles
    if mp != m:
        x_flat = jnp.pad(x_flat, ((0, mp - m), (0, 0)))

    out_flat = pl.pallas_call(
        _matmul_bias_kernel,
        out_shape=jax.ShapeDtypeStruct((mp, N_COLS), jnp.float32),
        grid_spec=pltpu.PrefetchScalarGridSpec(
            num_scalar_prefetch=0,
            grid=(mp // tm,),
            in_specs=[
                pl.BlockSpec((tm, cin), lambda i: (i, 0)),
                pl.BlockSpec((cin, N_COLS), lambda i: (0, 0)),
                pl.BlockSpec((1, N_COLS), lambda i: (0, 0)),
            ],
            out_specs=pl.BlockSpec((tm, N_COLS), lambda i: (i, 0)),
        ),
        compiler_params=pltpu.CompilerParams(
            dimension_semantics=("parallel",),
            vmem_limit_bytes=_vmem_limit()),
        cost_estimate=pl.CostEstimate(
            flops=2 * mp * cin * N_COLS,
            transcendentals=0,
            bytes_accessed=4 * (mp * (cin + N_COLS) + cin * N_COLS)),
    )(x_flat, w_flat, b_flat)

    if mp != m:
        out_flat = out_flat[:m]
    out = out_flat.reshape(n, d, h, w_sz, OUT_CH, KSIZE, KSIZE, KSIZE)
    out = jnp.transpose(out, (0, 4, 1, 5, 2, 6, 3, 7))
    return out.reshape(n, OUT_CH, d * KSIZE, h * KSIZE, w_sz * KSIZE)


def single_layer_decoder(x, weight, bias):
    """ConvTranspose3d(input_dim -> 3, kernel=(8,8,8), stride=(8,8,8)).

    x:      (N, Cin, D, H, W)   float32
    weight: (Cin, 3, 8, 8, 8)   float32   (PyTorch ConvTranspose3d layout)
    bias:   (3,)                float32
    returns (N, 3, D*8, H*8, W*8) float32
    """
    x = x.astype(jnp.float32)
    weight = weight.astype(jnp.float32)
    bias = bias.astype(jnp.float32)

    n, cin, d, h, w_sz = x.shape
    cfg = _pick_fused_tile(d, h, w_sz, cin, _vmem_limit())
    key = (x.shape, str(x.dtype), cfg)

    if cfg is not None and _PATH_CACHE.get(key, True):
        td, th = cfg
        try:
            out = _decoder_fused(x, weight, bias, td=td, th=th)
            _PATH_CACHE[key] = True
            return out
        except _FALLBACK_ERRORS as e:                       # lowering / compile-class only
            warnings.warn(
                "Fused ConvNetDecoder Pallas kernel unavailable for shape "
                f"{x.shape} (td={td}, th={th}): {e!r}; falling back to the "
                "matmul + XLA-layout path (~2x HBM traffic).")
            _PATH_CACHE[key] = False
    return _decoder_plain(x, weight, bias)


def _reference(x, weight, bias):
    # Pure-JAX reference of the same ConvTranspose3d (stride == kernel, no padding).
    y = jnp.einsum("ncdhw,cokij->ndhwokij", x, weight)
    y = y + bias[None, None, None, None, :, None, None, None]
    y = jnp.transpose(y, (0, 4, 1, 5, 2, 6, 3, 7))
    n, _, d, h, w = x.shape
    return y.reshape(n, OUT_CH, d * KSIZE, h * KSIZE, w * KSIZE)


if __name__ == "__main__":
    key = jax.random.PRNGKey(0)
    k_x, k_w, k_b = jax.random.split(key, 3)

    # Small shapes consistent with the module: batch=2, input_dim=4, spatial 4x4x4.
    batch, input_dim, D, H, W = 2, 4, 4, 4, 4
    x = jax.random.normal(k_x, (batch, input_dim, D, H, W), dtype=jnp.float32)

    fan = input_dim * KSIZE ** 3
    weight = jax.random.normal(k_w, (input_dim, OUT_CH, KSIZE, KSIZE, KSIZE),
                               dtype=jnp.float32) * (1.0 / fan ** 0.5)
    bias = jax.random.normal(k_b, (OUT_CH,), dtype=jnp.float32) * 0.01

    out = jax.block_until_ready(single_layer_decoder(x, weight, bias))

    ref = _reference(x, weight, bias)
    assert out.shape == (batch, OUT_CH, D * KSIZE, H * KSIZE, W * KSIZE), out.shape
    assert jnp.allclose(out, ref, atol=1e-4, rtol=1e-4), "mismatch vs reference"

    # The fallback path must also stay correct (it protects odd shapes / tight VMEM).
    out_plain = jax.block_until_ready(_decoder_plain(x, weight, bias))
    assert jnp.allclose(out_plain, ref, atol=1e-4, rtol=1e-4), "plain path mismatch"

    print("KERNEL_OK")
</pallas_src>

<mosaic_0001>
module attributes {stable_mosaic.version = 11 : i64} {
  func.func @_matmul_bias_kernel(%arg0: i32, %arg1: memref<128x4xf32, #tpu.memory_space<vmem>>, %arg2: memref<4x1536xf32, #tpu.memory_space<vmem>>, %arg3: memref<1x1536xf32, #tpu.memory_space<vmem>>, %arg4: memref<128x1536xf32, #tpu.memory_space<vmem>>) attributes {dimension_semantics = [#tpu.dimension_semantics<parallel>], iteration_bounds = array<i64: 1>, scalar_prefetch = 0 : i64, scratch_operands = 0 : i64, tpu.core_type = #tpu.core_type<tc>, window_params = [{transform_indices = @transform_0, window_bounds = array<i64: 128, 4>}, {pipeline_mode = #tpu.pipeline_mode<synchronous>, transform_indices = @transform_1, window_bounds = array<i64: 4, 1536>}, {pipeline_mode = #tpu.pipeline_mode<synchronous>, transform_indices = @transform_2, window_bounds = array<i64: 1, 1536>}, {transform_indices = @transform_3, window_bounds = array<i64: 128, 1536>}]} {
    %c0 = arith.constant 0 : index
    %c0_0 = arith.constant 0 : index
    %0 = vector.load %arg1[%c0, %c0_0] : memref<128x4xf32, #tpu.memory_space<vmem>>, vector<128x4xf32>
    %c0_1 = arith.constant 0 : index
    %c0_2 = arith.constant 0 : index
    %1 = vector.load %arg2[%c0_1, %c0_2] : memref<4x1536xf32, #tpu.memory_space<vmem>>, vector<4x1536xf32>
    %cst = arith.constant dense<0.000000e+00> : vector<128x1536xf32>
    %2 = tpu.matmul %0, %1, %cst {dimension_numbers = #tpu.dot_dimension_numbers<[1], [0], [0], [1], [0, 0, 1, 1], [], []>} : vector<128x4xf32>, vector<4x1536xf32>, vector<128x1536xf32> -> vector<128x1536xf32>
    %c0_3 = arith.constant 0 : index
    %c0_4 = arith.constant 0 : index
    %3 = vector.load %arg3[%c0_3, %c0_4] : memref<1x1536xf32, #tpu.memory_space<vmem>>, vector<1x1536xf32>
    %4 = vector.broadcast %3 : vector<1x1536xf32> to vector<128x1536xf32>
    %5 = arith.addf %2, %4 : vector<128x1536xf32>
    %c0_5 = arith.constant 0 : index
    %c0_6 = arith.constant 0 : index
    %6 = vector.load %arg4[%c0_5, %c0_6] : memref<128x1536xf32, #tpu.memory_space<vmem>>, vector<128x1536xf32>
    tpu.vector_store %arg4[%c0_5, %c0_6], %5 {strides = array<i32>} : memref<128x1536xf32, #tpu.memory_space<vmem>>, vector<128x1536xf32>,
    return
  }
  func.func @transform_0(%arg0: i32) -> (i32, i32) {
    %c0_i32 = arith.constant 0 : i32
    %c0_i32_0 = arith.constant 0 : i32
    return %arg0, %c0_i32 : i32, i32
  }
  func.func @transform_1(%arg0: i32) -> (i32, i32) {
    %c0_i32 = arith.constant 0 : i32
    %c0_i32_0 = arith.constant 0 : i32
    %c0_i32_1 = arith.constant 0 : i32
    return %c0_i32, %c0_i32_0 : i32, i32
  }
  func.func @transform_2(%arg0: i32) -> (i32, i32) {
    %c0_i32 = arith.constant 0 : i32
    %c0_i32_0 = arith.constant 0 : i32
    %c0_i32_1 = arith.constant 0 : i32
    return %c0_i32, %c0_i32_0 : i32, i32
  }
  func.func @transform_3(%arg0: i32) -> (i32, i32) {
    %c0_i32 = arith.constant 0 : i32
    %c0_i32_0 = arith.constant 0 : i32
    return %arg0, %c0_i32 : i32, i32
  }
}

</mosaic_0001>

<bundles_post_ra>
// kernel: _decoder_plain.1
= control target key start
LH: loop header
LB: loop body
LE: loop exit
PB: predicated region body
PF: predicated region fallthrough
CT: control target
= control target key end

     0   :  { %vm140_vm0 = vcmask 1043456   ;;  %vm91_vm1 = vcmask 31744   ;;  %s2667_s1 = inlined_call_operand.vmem [shape: f32[4,1536], index: 1, kind: input, shape index: {}]   ;;  %s2668_s0 = inlined_call_operand.vmem [shape: f32[128,4], index: 0, kind: input, shape index: {}]   ;;  %s2669_s2 = inlined_call_operand.vmem [shape: f32[1,1536], index: 2, kind: input, shape index: {}]   ;;  %s2670_s3 = inlined_call_operand.vmem [shape: f32[128,1536], index: 3, kind: output, shape index: {}]  }
   0x1   :  { %v31_v0 = vld [vmem:[%s2667_s1 + $0x8] sm:$0xff]  ;;  %v33_v1 = vld [vmem:[%s2667_s1 + $0x18] sm:$0xff]  ;;  %v30_v2 = vld [vmem:[%s2667_s1] sm:$0xff] }
   0x2   :  { %72 = vst [vmem:[#allocation1 + $0x10] ss:$2 sm:$0xff] %v31_v0  ;;  %v32_v3 = vld [vmem:[%s2667_s1 + $0x10] sm:$0xff]  ;;  %v35_v4 = vld [vmem:[%s2667_s1 + $0x28] sm:$0xff]  ;;  %v1384_v5 = vld [vmem:[%s2668_s0] sm:$0xff] }
   0x3   :  { %76 = vst [vmem:[#allocation1 + $0x30] ss:$2 sm:$0xff] %v33_v1  ;;  %v34_v9 = vld [vmem:[%s2667_s1 + $0x20] sm:$0xff]  ;;  %v1408_v15 = vld [vmem:[%s2668_s0 + $0x8] sm:$0xff]  ;;  %v1421_v16 = vld [vmem:[%s2668_s0 + $0x10] sm:$0xff] }
   0x4   :  { %70 = vst [vmem:[#allocation1] ss:$2 sm:$0xff] %v30_v2  ;;  %v1434_v17 = vld [vmem:[%s2668_s0 + $0x18] sm:$0xff]  ;;  %v1447_v18 = vld [vmem:[%s2668_s0 + $0x20] sm:$0xff]  ;;  %v1460_v19 = vld [vmem:[%s2668_s0 + $0x28] sm:$0xff] }
   0x5   :  { %74 = vst [vmem:[#allocation1 + $0x20] ss:$2 sm:$0xff] %v32_v3  ;;  %v1473_v20 = vld [vmem:[%s2668_s0 + $0x30] sm:$0xff]  ;;  %v1486_v21 = vld [vmem:[%s2668_s0 + $0x38] sm:$0xff]  ;;  %v1499_v22 = vld [vmem:[%s2668_s0 + $0x40] sm:$0xff] }
   0x6   :  { %v1512_v23 = vld [vmem:[%s2668_s0 + $0x48] sm:$0xff]  ;;  %v1525_v24 = vld [vmem:[%s2668_s0 + $0x50] sm:$0xff]  ;;  %v1538_v25 = vld [vmem:[%s2668_s0 + $0x58] sm:$0xff] }
   0x7   :  { %v1551_v26 = vld [vmem:[%s2668_s0 + $0x60] sm:$0xff]  ;;  %v1566_v29 = vld [vmem:[%s2668_s0 + $0x68] sm:$0xff]  ;;  %v1581_v32 = vld [vmem:[%s2668_s0 + $0x70] sm:$0xff] }
   0x8   :  { %v1594_v33 = vld [vmem:[%s2668_s0 + $0x78] sm:$0xff]  ;;  %v1603_v34 = vld [vmem:[%s2669_s2] sm:$0xff] }
   0x9   :  { %v79_v6 = vld.sshfl [vmem:[#allocation1 + $0x10] sm:$0xff pattern:$0x75316420]  ;;  %v80_v7 = vld.sshfl [vmem:[#allocation1 + $0x18] sm:$0xff pattern:$0x75316420] }
   0xa   :  { %1175 = vmatpush.msk.msra.mxu2 %vm140_vm0, %v79_v6  ;;  %86 = vst [vmem:[#allocation1 + $0x10] ss:$2 sm:$0xff] %v35_v4  ;;  %1192 = vmatpush.msk.msra.mxu3 %vm140_vm0, %v80_v7  ;;  %v83_v8 = vld.sshfl [vmem:[#allocation1 + $0x30] sm:$0xff pattern:$0x75316420]  ;;  %v1610_v35 = vperm.slane %v1603_v34, 0 }
   0xb   :  { %1176 = vmatmul.msk.f32.vlgmr.msra.gmra.mxu2 %vm91_vm1, %v1384_v5  ;;  %1193 = vmatmul.msk.f32.vlgmr.msra.gmra.mxu3 %vm91_vm1, %v1384_v5  ;;  %v84_v10 = vld.sshfl [vmem:[#allocation1 + $0x38] sm:$0xff pattern:$0x75316420]  ;;  %v77_v11 = vld.sshfl [vmem:[#allocation1] sm:$0xff pattern:$0x75316420] }
   0xc   :  { %1243 = vmatpush.msk.msrb.mxu2 %vm140_vm0, %v83_v8  ;;  %1260 = vmatpush.msk.msrb.mxu3 %vm140_vm0, %v84_v10  ;;  %v78_v12 = vld.sshfl [vmem:[#allocation1 + $0x8] sm:$0xff pattern:$0x75316420]  ;;  %v81_v13 = vld.sshfl [vmem:[#allocation1 + $0x20] sm:$0xff pattern:$0x75316420] }
   0xd   :  { %1141 = vmatpush.msk.msra.mxu0 %vm140_vm0, %v77_v11  ;;  %85 = vst [vmem:[#allocation1] ss:$2 sm:$0xff] %v34_v9  ;;  %1158 = vmatpush.msk.msra.mxu1 %vm140_vm0, %v78_v12  ;;  %v82_v14 = vld.sshfl [vmem:[#allocation1 + $0x28] sm:$0xff pattern:$0x75316420]  ;;  %v1613_v36 = vperm.slane %v1603_v34, 1 }
   0xe   :  { %1142 = vmatmul.msk.f32.vlgmr.msra.gmra.mxu0 %vm91_vm1, %v1384_v5  ;;  %1159 = vmatmul.msk.f32.vlgmr.msra.gmra.mxu1 %vm91_vm1, %v1384_v5  ;;  %v1620_v39 = vperm.slane %v1603_v34, 2  ;;  %v1623_v40 = vperm.slane %v1603_v34, 3 }
   0xf   :  { %1209 = vmatpush.msk.msrb.mxu0 %vm140_vm0, %v81_v13  ;;  %1226 = vmatpush.msk.msrb.mxu1 %vm140_vm0, %v82_v14 }
  0x11   :  { %v89_v27 = vld.sshfl [vmem:[#allocation1 + $0x10] sm:$0xff pattern:$0x75316420]  ;;  %v90_v28 = vld.sshfl [vmem:[#allocation1 + $0x18] sm:$0xff pattern:$0x75316420] }
  0x12   :  { %1311 = vmatpush.msk.msra.mxu2 %vm140_vm0, %v89_v27  ;;  %1328 = vmatpush.msk.msra.mxu3 %vm140_vm0, %v90_v28 }
  0x13   :  { %1177 = vmatmul.msk.f32.gmra.mxu2 %vm91_vm1, %v1408_v15  ;;  %1194 = vmatmul.msk.f32.gmra.mxu3 %vm91_vm1, %v1408_v15 }
  0x14   :  { %v87_v30 = vld.sshfl [vmem:[#allocation1] sm:$0xff pattern:$0x75316420]  ;;  %v88_v31 = vld.sshfl [vmem:[#allocation1 + $0x8] sm:$0xff pattern:$0x75316420] }
  0x15   :  { %1277 = vmatpush.msk.msra.mxu0 %vm140_vm0, %v87_v30  ;;  %1294 = vmatpush.msk.msra.mxu1 %vm140_vm0, %v88_v31 }
  0x16   :  { %1143 = vmatmul.msk.f32.gmra.mxu0 %vm91_vm1, %v1408_v15  ;;  %1160 = vmatmul.msk.f32.gmra.mxu1 %vm91_vm1, %v1408_v15 }
  0x1b   :  { %1178 = vmatmul.msk.f32.gmra.mxu2 %vm91_vm1, %v1421_v16  ;;  %1195 = vmatmul.msk.f32.gmra.mxu3 %vm91_vm1, %v1421_v16 }
  0x1e   :  { %1144 = vmatmul.msk.f32.gmra.mxu0 %vm91_vm1, %v1421_v16  ;;  %1161 = vmatmul.msk.f32.gmra.mxu1 %vm91_vm1, %v1421_v16 }
  0x23   :  { %1179 = vmatmul.msk.f32.gmra.mxu2 %vm91_vm1, %v1434_v17  ;;  %1196 = vmatmul.msk.f32.gmra.mxu3 %vm91_vm1, %v1434_v17 }
  0x26   :  { %1145 = vmatmul.msk.f32.gmra.mxu0 %vm91_vm1, %v1434_v17  ;;  %1162 = vmatmul.msk.f32.gmra.mxu1 %vm91_vm1, %v1434_v17 }
  0x2b   :  { %1180 = vmatmul.msk.f32.gmra.mxu2 %vm91_vm1, %v1447_v18  ;;  %1197 = vmatmul.msk.f32.gmra.mxu3 %vm91_vm1, %v1447_v18 }
  0x2e   :  { %1146 = vmatmul.msk.f32.gmra.mxu0 %vm91_vm1, %v1447_v18  ;;  %1163 = vmatmul.msk.f32.gmra.mxu1 %vm91_vm1, %v1447_v18 }
  0x33   :  { %1181 = vmatmul.msk.f32.gmra.mxu2 %vm91_vm1, %v1460_v19  ;;  %1198 = vmatmul.msk.f32.gmra.mxu3 %vm91_vm1, %v1460_v19 }
  0x36   :  { %1147 = vmatmul.msk.f32.gmra.mxu0 %vm91_vm1, %v1460_v19  ;;  %1164 = vmatmul.msk.f32.gmra.mxu1 %vm91_vm1, %v1460_v19 }
  0x3b   :  { %1182 = vmatmul.msk.f32.gmra.mxu2 %vm91_vm1, %v1473_v20  ;;  %1199 = vmatmul.msk.f32.gmra.mxu3 %vm91_vm1, %v1473_v20 }
  0x3e   :  { %1148 = vmatmul.msk.f32.gmra.mxu0 %vm91_vm1, %v1473_v20  ;;  %1165 = vmatmul.msk.f32.gmra.mxu1 %vm91_vm1, %v1473_v20 }
  0x43   :  { %1183 = vmatmul.msk.f32.gmra.mxu2 %vm91_vm1, %v1486_v21  ;;  %1200 = vmatmul.msk.f32.gmra.mxu3 %vm91_vm1, %v1486_v21 }
  0x46   :  { %1149 = vmatmul.msk.f32.gmra.mxu0 %vm91_vm1, %v1486_v21  ;;  %1166 = vmatmul.msk.f32.gmra.mxu1 %vm91_vm1, %v1486_v21 }
  0x4b   :  { %1184 = vmatmul.msk.f32.gmra.mxu2 %vm91_vm1, %v1499_v22  ;;  %1201 = vmatmul.msk.f32.gmra.mxu3 %vm91_vm1, %v1499_v22 }
  0x4e   :  { %1150 = vmatmul.msk.f32.gmra.mxu0 %vm91_vm1, %v1499_v22  ;;  %1167 = vmatmul.msk.f32.gmra.mxu1 %vm91_vm1, %v1499_v22 }
  0x53   :  { %1185 = vmatmul.msk.f32.gmra.mxu2 %vm91_vm1, %v1512_v23  ;;  %1202 = vmatmul.msk.f32.gmra.mxu3 %vm91_vm1, %v1512_v23 }
  0x56   :  { %1151 = vmatmul.msk.f32.gmra.mxu0 %vm91_vm1, %v1512_v23  ;;  %1168 = vmatmul.msk.f32.gmra.mxu1 %vm91_vm1, %v1512_v23 }
  0x5b   :  { %1186 = vmatmul.msk.f32.gmra.mxu2 %vm91_vm1, %v1525_v24  ;;  %1203 = vmatmul.msk.f32.gmra.mxu3 %vm91_vm1, %v1525_v24 }
  0x5e   :  { %1152 = vmatmul.msk.f32.gmra.mxu0 %vm91_vm1, %v1525_v24  ;;  %1169 = vmatmul.msk.f32.gmra.mxu1 %vm91_vm1, %v1525_v24 }
  0x63   :  { %1187 = vmatmul.msk.f32.gmra.mxu2 %vm91_vm1, %v1538_v25  ;;  %1204 = vmatmul.msk.f32.gmra.mxu3 %vm91_vm1, %v1538_v25 }
  0x66   :  { %1153 = vmatmul.msk.f32.gmra.mxu0 %vm91_vm1, %v1538_v25  ;;  %1170 = vmatmul.msk.f32.gmra.mxu1 %vm91_vm1, %v1538_v25 }
  0x6b   :  { %1188 = vmatmul.msk.f32.gmra.mxu2 %vm91_vm1, %v1551_v26  ;;  %1205 = vmatmul.msk.f32.gmra.mxu3 %vm91_vm1, %v1551_v26 }
  0x6e   :  { %1154 = vmatmul.msk.f32.gmra.mxu0 %vm91_vm1, %v1551_v26  ;;  %1171 = vmatmul.msk.f32.gmra.mxu1 %vm91_vm1, %v1551_v26 }
  0x73   :  { %1189 = vmatmul.msk.f32.gmra.mxu2 %vm91_vm1, %v1566_v29  ;;  %1206 = vmatmul.msk.f32.gmra.mxu3 %vm91_vm1, %v1566_v29 }
  0x76   :  { %1155 = vmatmul.msk.f32.gmra.mxu0 %vm91_vm1, %v1566_v29  ;;  %1172 = vmatmul.msk.f32.gmra.mxu1 %vm91_vm1, %v1566_v29 }
  0x7b   :  { %1190 = vmatmul.msk.f32.gmra.mxu2 %vm91_vm1, %v1581_v32  ;;  %1207 = vmatmul.msk.f32.gmra.mxu3 %vm91_vm1, %v1581_v32 }
  0x7e   :  { %1156 = vmatmul.msk.f32.gmra.mxu0 %vm91_vm1, %v1581_v32  ;;  %1173 = vmatmul.msk.f32.gmra.mxu1 %vm91_vm1, %v1581_v32 }
  0x83   :  { %1191 = vmatmul.msk.f32.gmra.mxu2 %vm91_vm1, %v1594_v33  ;;  %1208 = vmatmul.msk.f32.gmra.mxu3 %vm91_vm1, %v1594_v33 }
  0x86   :  { %1157 = vmatmul.msk.f32.gmra.mxu0 %vm91_vm1, %v1594_v33  ;;  %1174 = vmatmul.msk.f32.gmra.mxu1 %vm91_vm1, %v1594_v33 }
  0x8b   :  { %1244 = vmatmul.msk.f32.vlgmr.msrb.gmra.mxu2 %vm91_vm1, %v1384_v5  ;;  %1261 = vmatmul.msk.f32.vlgmr.msrb.gmra.mxu3 %vm91_vm1, %v1384_v5  ;;  %v182_v37 = vpop.f32.mrf.mxu0  ;;  %v247_v38 = vpop.f32.mrf.mxu1 }
  0x8c   :  { %v183_v41 = vadd.f32 %v182_v37, %v1610_v35  ;;  %v248_v42 = vadd.f32 %v247_v38, %v1613_v36 }
  0x8e   :  { %945 = vst [vmem:[%s2670_s3] sm:$0xff] %v183_v41  ;;  %v312_v43 = vpop.f32.mrf.mxu2  ;;  %v377_v44 = vpop.f32.mrf.mxu3  ;;  %1210 = vmatmul.msk.f32.vlgmr.msrb.gmra.mxu0 %vm91_vm1, %v1384_v5  ;;  %1227 = vmatmul.msk.f32.vlgmr.msrb.gmra.mxu1 %vm91_vm1, %v1384_v5 }
  0x8f   :  { %946 = vst [vmem:[%s2670_s3 + $0x8] sm:$0xff] %v248_v42  ;;  %v313_v45 = vadd.f32 %v312_v43, %v1620_v39  ;;  %v378_v46 = vadd.f32 %v377_v44, %v1623_v40 }
  0x91   :  { %947 = vst [vmem:[%s2670_s3 + $0x10] sm:$0xff] %v313_v45 }
  0x92   :  { %948 = vst [vmem:[%s2670_s3 + $0x18] sm:$0xff] %v378_v46 }
  0x93   :  { %1245 = vmatmul.msk.f32.gmra.mxu2 %vm91_vm1, %v1408_v15  ;;  %1262 = vmatmul.msk.f32.gmra.mxu3 %vm91_vm1, %v1408_v15  ;;  %v185_v47 = vpop.f32.mrf.mxu0  ;;  %v250_v48 = vpop.f32.mrf.mxu1 }
  0x94   :  { %v186_v49 = vadd.f32 %v185_v47, %v1610_v35  ;;  %v251_v50 = vadd.f32 %v250_v48, %v1613_v36 }
  0x96   :  { %957 = vst [vmem:[%s2670_s3 + $0x60] sm:$0xff] %v186_v49  ;;  %v315_v51 = vpop.f32.mrf.mxu2  ;;  %v380_v52 = vpop.f32.mrf.mxu3  ;;  %1211 = vmatmul.msk.f32.gmra.mxu0 %vm91_vm1, %v1408_v15  ;;  %1228 = vmatmul.msk.f32.gmra.mxu1 %vm91_vm1, %v1408_v15 }
  0x97   :  { %958 = vst [vmem:[%s2670_s3 + $0x68] sm:$0xff] %v251_v50  ;;  %v316_v53 = vadd.f32 %v315_v51, %v1620_v39  ;;  %v381_v54 = vadd.f32 %v380_v52, %v1623_v40 }
  0x99   :  { %959 = vst [vmem:[%s2670_s3 + $0x70] sm:$0xff] %v316_v53 }
  0x9a   :  { %960 = vst [vmem:[%s2670_s3 + $0x78] sm:$0xff] %v381_v54 }
  0x9b   :  { %1246 = vmatmul.msk.f32.gmra.mxu2 %vm91_vm1, %v1421_v16  ;;  %1263 = vmatmul.msk.f32.gmra.mxu3 %vm91_vm1, %v1421_v16  ;;  %v188_v55 = vpop.f32.mrf.mxu0  ;;  %v253_v56 = vpop.f32.mrf.mxu1 }
  0x9c   :  { %v189_v57 = vadd.f32 %v188_v55, %v1610_v35  ;;  %v254_v58 = vadd.f32 %v253_v56, %v1613_v36 }
  0x9e   :  { %969 = vst [vmem:[%s2670_s3 + $0xc0] sm:$0xff] %v189_v57  ;;  %v318_v59 = vpop.f32.mrf.mxu2  ;;  %v383_v60 = vpop.f32.mrf.mxu3  ;;  %1212 = vmatmul.msk.f32.gmra.mxu0 %vm91_vm1, %v1421_v16  ;;  %1229 = vmatmul.msk.f32.gmra.mxu1 %vm91_vm1, %v1421_v16 }
  0x9f   :  { %970 = vst [vmem:[%s2670_s3 + $0xc8] sm:$0xff] %v254_v58  ;;  %v319_v61 = vadd.f32 %v318_v59, %v1620_v39  ;;  %v384_v62 = vadd.f32 %v383_v60, %v1623_v40 }
  0xa1   :  { %971 = vst [vmem:[%s2670_s3 + $0xd0] sm:$0xff] %v319_v61 }
  0xa2   :  { %972 = vst [vmem:[%s2670_s3 + $0xd8] sm:$0xff] %v384_v62 }
  0xa3   :  { %1247 = vmatmul.msk.f32.gmra.mxu2 %vm91_vm1, %v1434_v17  ;;  %1264 = vmatmul.msk.f32.gmra.mxu3 %vm91_vm1, %v1434_v17  ;;  %v191_v63 = vpop.f32.mrf.mxu0  ;;  %v256_v0 = vpop.f32.mrf.mxu1 }
  0xa4   :  { %v192_v1 = vadd.f32 %v191_v63, %v1610_v35  ;;  %v257_v2 = vadd.f32 %v256_v0, %v1613_v36 }
  0xa6   :  { %981 = vst [vmem:[%s2670_s3 + $0x120] sm:$0xff] %v192_v1  ;;  %v321_v3 = vpop.f32.mrf.mxu2  ;;  %v386_v4 = vpop.f32.mrf.mxu3  ;;  %1213 = vmatmul.msk.f32.gmra.mxu0 %vm91_vm1, %v1434_v17  ;;  %1230 = vmatmul.msk.f32.gmra.mxu1 %vm91_vm1, %v1434_v17 }
  0xa7   :  { %982 = vst [vmem:[%s2670_s3 + $0x128] sm:$0xff] %v257_v2  ;;  %v322_v6 = vadd.f32 %v321_v3, %v1620_v39  ;;  %v387_v7 = vadd.f32 %v386_v4, %v1623_v40 }
  0xa9   :  { %983 = vst [vmem:[%s2670_s3 + $0x130] sm:$0xff] %v322_v6 }
  0xaa   :  { %984 = vst [vmem:[%s2670_s3 + $0x138] sm:$0xff] %v387_v7 }
  0xab   :  { %1248 = vmatmul.msk.f32.gmra.mxu2 %vm91_vm1, %v1447_v18  ;;  %1265 = vmatmul.msk.f32.gmra.mxu3 %vm91_vm1, %v1447_v18  ;;  %v194_v8 = vpop.f32.mrf.mxu0  ;;  %v259_v9 = vpop.f32.mrf.mxu1 }
  0xac   :  { %v195_v10 = vadd.f32 %v194_v8, %v1610_v35  ;;  %v260_v11 = vadd.f32 %v259_v9, %v1613_v36 }
  0xae   :  { %993 = vst [vmem:[%s2670_s3 + $0x180] sm:$0xff] %v195_v10  ;;  %v324_v12 = vpop.f32.mrf.mxu2  ;;  %v389_v13 = vpop.f32.mrf.mxu3  ;;  %1214 = vmatmul.msk.f32.gmra.mxu0 %vm91_vm1, %v1447_v18  ;;  %1231 = vmatmul.msk.f32.gmra.mxu1 %vm91_vm1, %v1447_v18 }
  0xaf   :  { %994 = vst [vmem:[%s2670_s3 + $0x188] sm:$0xff] %v260_v11  ;;  %v325_v14 = vadd.f32 %v324_v12, %v1620_v39  ;;  %v390_v27 = vadd.f32 %v389_v13, %v1623_v40 }
  0xb1   :  { %995 = vst [vmem:[%s2670_s3 + $0x190] sm:$0xff] %v325_v14 }
  0xb2   :  { %996 = vst [vmem:[%s2670_s3 + $0x198] sm:$0xff] %v390_v27 }
  0xb3   :  { %1249 = vmatmul.msk.f32.gmra.mxu2 %vm91_vm1, %v1460_v19  ;;  %1266 = vmatmul.msk.f32.gmra.mxu3 %vm91_vm1, %v1460_v19  ;;  %v197_v28 = vpop.f32.mrf.mxu0  ;;  %v262_v30 = vpop.f32.mrf.mxu1 }
  0xb4   :  { %v198_v31 = vadd.f32 %v197_v28, %v1610_v35  ;;  %v263_v37 = vadd.f32 %v262_v30, %v1613_v36 }
  0xb6   :  { %1005 = vst [vmem:[%s2670_s3 + $0x1e0] sm:$0xff] %v198_v31  ;;  %v327_v38 = vpop.f32.mrf.mxu2  ;;  %v392_v41 = vpop.f32.mrf.mxu3  ;;  %1215 = vmatmul.msk.f32.gmra.mxu0 %vm91_vm1, %v1460_v19  ;;  %1232 = vmatmul.msk.f32.gmra.mxu1 %vm91_vm1, %v1460_v19 }
  0xb7   :  { %1006 = vst [vmem:[%s2670_s3 + $0x1e8] sm:$0xff] %v263_v37  ;;  %v328_v42 = vadd.f32 %v327_v38, %v1620_v39  ;;  %v393_v43 = vadd.f32 %v392_v41, %v1623_v40 }
  0xb9   :  { %1007 = vst [vmem:[%s2670_s3 + $0x1f0] sm:$0xff] %v328_v42 }
  0xba   :  { %1008 = vst [vmem:[%s2670_s3 + $0x1f8] sm:$0xff] %v393_v43 }
  0xbb   :  { %1250 = vmatmul.msk.f32.gmra.mxu2 %vm91_vm1, %v1473_v20  ;;  %1267 = vmatmul.msk.f32.gmra.mxu3 %vm91_vm1, %v1473_v20  ;;  %v200_v44 = vpop.f32.mrf.mxu0  ;;  %v265_v45 = vpop.f32.mrf.mxu1 }
  0xbc   :  { %v201_v46 = vadd.f32 %v200_v44, %v1610_v35  ;;  %v266_v47 = vadd.f32 %v265_v45, %v1613_v36 }
  0xbe   :  { %1017 = vst [vmem:[%s2670_s3 + $0x240] sm:$0xff] %v201_v46  ;;  %v330_v48 = vpop.f32.mrf.mxu2  ;;  %v395_v49 = vpop.f32.mrf.mxu3  ;;  %1216 = vmatmul.msk.f32.gmra.mxu0 %vm91_vm1, %v1473_v20  ;;  %1233 = vmatmul.msk.f32.gmra.mxu1 %vm91_vm1, %v1473_v20 }
  0xbf   :  { %1018 = vst [vmem:[%s2670_s3 + $0x248] sm:$0xff] %v266_v47  ;;  %v331_v50 = vadd.f32 %v330_v48, %v1620_v39  ;;  %v396_v51 = vadd.f32 %v395_v49, %v1623_v40 }
  0xc1   :  { %1019 = vst [vmem:[%s2670_s3 + $0x250] sm:$0xff] %v331_v50 }
  0xc2   :  { %1020 = vst [vmem:[%s2670_s3 + $0x258] sm:$0xff] %v396_v51 }
  0xc3   :  { %1251 = vmatmul.msk.f32.gmra.mxu2 %vm91_vm1, %v1486_v21  ;;  %1268 = vmatmul.msk.f32.gmra.mxu3 %vm91_vm1, %v1486_v21  ;;  %v203_v52 = vpop.f32.mrf.mxu0  ;;  %v268_v53 = vpop.f32.mrf.mxu1 }
  0xc4   :  { %v204_v54 = vadd.f32 %v203_v52, %v1610_v35  ;;  %v269_v55 = vadd.f32 %v268_v53, %v1613_v36 }
  0xc6   :  { %1029 = vst [vmem:[%s2670_s3 + $0x2a0] sm:$0xff] %v204_v54  ;;  %v333_v56 = vpop.f32.mrf.mxu2  ;;  %v398_v57 = vpop.f32.mrf.mxu3  ;;  %1217 = vmatmul.msk.f32.gmra.mxu0 %vm91_vm1, %v1486_v21  ;;  %1234 = vmatmul.msk.f32.gmra.mxu1 %vm91_vm1, %v1486_v21 }
  0xc7   :  { %1030 = vst [vmem:[%s2670_s3 + $0x2a8] sm:$0xff] %v269_v55  ;;  %v334_v58 = vadd.f32 %v333_v56, %v1620_v39  ;;  %v399_v59 = vadd.f32 %v398_v57, %v1623_v40 }
  0xc9   :  { %1031 = vst [vmem:[%s2670_s3 + $0x2b0] sm:$0xff] %v334_v58 }
  0xca   :  { %1032 = vst [vmem:[%s2670_s3 + $0x2b8] sm:$0xff] %v399_v59 }
  0xcb   :  { %1252 = vmatmul.msk.f32.gmra.mxu2 %vm91_vm1, %v1499_v22  ;;  %1269 = vmatmul.msk.f32.gmra.mxu3 %vm91_vm1, %v1499_v22  ;;  %v206_v60 = vpop.f32.mrf.mxu0  ;;  %v271_v61 = vpop.f32.mrf.mxu1 }
  0xcc   :  { %v207_v62 = vadd.f32 %v206_v60, %v1610_v35  ;;  %v272_v63 = vadd.f32 %v271_v61, %v1613_v36 }
  0xce   :  { %1041 = vst [vmem:[%s2670_s3 + $0x300] sm:$0xff] %v207_v62  ;;  %v336_v0 = vpop.f32.mrf.mxu2  ;;  %v401_v1 = vpop.f32.mrf.mxu3  ;;  %1218 = vmatmul.msk.f32.gmra.mxu0 %vm91_vm1, %v1499_v22  ;;  %1235 = vmatmul.msk.f32.gmra.mxu1 %vm91_vm1, %v1499_v22 }
  0xcf   :  { %1042 = vst [vmem:[%s2670_s3 + $0x308] sm:$0xff] %v272_v63  ;;  %v337_v2 = vadd.f32 %v336_v0, %v1620_v39  ;;  %v402_v3 = vadd.f32 %v401_v1, %v1623_v40 }
  0xd1   :  { %1043 = vst [vmem:[%s2670_s3 + $0x310] sm:$0xff] %v337_v2 }
  0xd2   :  { %1044 = vst [vmem:[%s2670_s3 + $0x318] sm:$0xff] %v402_v3 }
  0xd3   :  { %1253 = vmatmul.msk.f32.gmra.mxu2 %vm91_vm1, %v1512_v23  ;;  %1270 = vmatmul.msk.f32.gmra.mxu3 %vm91_vm1, %v1512_v23  ;;  %v209_v4 = vpop.f32.mrf.mxu0  ;;  %v274_v6 = vpop.f32.mrf.mxu1 }
  0xd4   :  { %v210_v7 = vadd.f32 %v209_v4, %v1610_v35  ;;  %v275_v8 = vadd.f32 %v274_v6, %v1613_v36 }
  0xd6   :  { %1053 = vst [vmem:[%s2670_s3 + $0x360] sm:$0xff] %v210_v7  ;;  %v339_v9 = vpop.f32.mrf.mxu2  ;;  %v404_v10 = vpop.f32.mrf.mxu3  ;;  %1219 = vmatmul.msk.f32.gmra.mxu0 %vm91_vm1, %v1512_v23  ;;  %1236 = vmatmul.msk.f32.gmra.mxu1 %vm91_vm1, %v1512_v23 }
  0xd7   :  { %1054 = vst [vmem:[%s2670_s3 + $0x368] sm:$0xff] %v275_v8  ;;  %v340_v11 = vadd.f32 %v339_v9, %v1620_v39  ;;  %v405_v12 = vadd.f32 %v404_v10, %v1623_v40 }
  0xd9   :  { %1055 = vst [vmem:[%s2670_s3 + $0x370] sm:$0xff] %v340_v11 }
  0xda   :  { %1056 = vst [vmem:[%s2670_s3 + $0x378] sm:$0xff] %v405_v12 }
  0xdb   :  { %1254 = vmatmul.msk.f32.gmra.mxu2 %vm91_vm1, %v1525_v24  ;;  %1271 = vmatmul.msk.f32.gmra.mxu3 %vm91_vm1, %v1525_v24  ;;  %v212_v13 = vpop.f32.mrf.mxu0  ;;  %v277_v14 = vpop.f32.mrf.mxu1 }
  0xdc   :  { %v213_v27 = vadd.f32 %v212_v13, %v1610_v35  ;;  %v278_v28 = vadd.f32 %v277_v14, %v1613_v36 }
  0xde   :  { %1065 = vst [vmem:[%s2670_s3 + $0x3c0] sm:$0xff] %v213_v27  ;;  %v342_v30 = vpop.f32.mrf.mxu2  ;;  %v407_v31 = vpop.f32.mrf.mxu3  ;;  %1220 = vmatmul.msk.f32.gmra.mxu0 %vm91_vm1, %v1525_v24  ;;  %1237 = vmatmul.msk.f32.gmra.mxu1 %vm91_vm1, %v1525_v24 }
  0xdf   :  { %1066 = vst [vmem:[%s2670_s3 + $0x3c8] sm:$0xff] %v278_v28  ;;  %v343_v37 = vadd.f32 %v342_v30, %v1620_v39  ;;  %v408_v38 = vadd.f32 %v407_v31, %v1623_v40  ;;  %v2000_v28 = vperm.slane %v1603_v34, 4  ;;  %v2003_v30 = vperm.slane %v1603_v34, 5 }
  0xe0   :  { %v2019_v31 = vperm.slane %v1603_v34, 7 }
  0xe1   :  { %1067 = vst [vmem:[%s2670_s3 + $0x3d0] sm:$0xff] %v343_v37 }
  0xe2   :  { %1068 = vst [vmem:[%s2670_s3 + $0x3d8] sm:$0xff] %v408_v38 }
  0xe3   :  { %1255 = vmatmul.msk.f32.gmra.mxu2 %vm91_vm1, %v1538_v25  ;;  %1272 = vmatmul.msk.f32.gmra.mxu3 %vm91_vm1, %v1538_v25  ;;  %v215_v41 = vpop.f32.mrf.mxu0  ;;  %v280_v42 = vpop.f32.mrf.mxu1 }
  0xe4   :  { %v216_v43 = vadd.f32 %v215_v41, %v1610_v35  ;;  %v281_v44 = vadd.f32 %v280_v42, %v1613_v36 }
  0xe6   :  { %1077 = vst [vmem:[%s2670_s3 + $0x420] sm:$0xff] %v216_v43  ;;  %v345_v45 = vpop.f32.mrf.mxu2  ;;  %v410_v46 = vpop.f32.mrf.mxu3  ;;  %1221 = vmatmul.msk.f32.gmra.mxu0 %vm91_vm1, %v1538_v25  ;;  %1238 = vmatmul.msk.f32.gmra.mxu1 %vm91_vm1, %v1538_v25 }
  0xe7   :  { %1078 = vst [vmem:[%s2670_s3 + $0x428] sm:$0xff] %v281_v44  ;;  %v346_v47 = vadd.f32 %v345_v45, %v1620_v39  ;;  %v411_v48 = vadd.f32 %v410_v46, %v1623_v40 }
  0xe9   :  { %1079 = vst [vmem:[%s2670_s3 + $0x430] sm:$0xff] %v346_v47 }
  0xea   :  { %1080 = vst [vmem:[%s2670_s3 + $0x438] sm:$0xff] %v411_v48 }
  0xeb   :  { %1256 = vmatmul.msk.f32.gmra.mxu2 %vm91_vm1, %v1551_v26  ;;  %1273 = vmatmul.msk.f32.gmra.mxu3 %vm91_vm1, %v1551_v26  ;;  %v218_v49 = vpop.f32.mrf.mxu0  ;;  %v283_v50 = vpop.f32.mrf.mxu1 }
  0xec   :  { %v219_v51 = vadd.f32 %v218_v49, %v1610_v35  ;;  %v284_v52 = vadd.f32 %v283_v50, %v1613_v36 }
  0xee   :  { %1089 = vst [vmem:[%s2670_s3 + $0x480] sm:$0xff] %v219_v51  ;;  %v348_v53 = vpop.f32.mrf.mxu2  ;;  %v413_v54 = vpop.f32.mrf.mxu3  ;;  %1222 = vmatmul.msk.f32.gmra.mxu0 %vm91_vm1, %v1551_v26  ;;  %1239 = vmatmul.msk.f32.gmra.mxu1 %vm91_vm1, %v1551_v26 }
  0xef   :  { %1090 = vst [vmem:[%s2670_s3 + $0x488] sm:$0xff] %v284_v52  ;;  %v349_v55 = vadd.f32 %v348_v53, %v1620_v39  ;;  %v414_v56 = vadd.f32 %v413_v54, %v1623_v40 }
  0xf1   :  { %1091 = vst [vmem:[%s2670_s3 + $0x490] sm:$0xff] %v349_v55 }
  0xf2   :  { %1092 = vst [vmem:[%s2670_s3 + $0x498] sm:$0xff] %v414_v56 }
  0xf3   :  { %1257 = vmatmul.msk.f32.gmra.mxu2 %vm91_vm1, %v1566_v29  ;;  %1274 = vmatmul.msk.f32.gmra.mxu3 %vm91_vm1, %v1566_v29  ;;  %v221_v57 = vpop.f32.mrf.mxu0  ;;  %v286_v58 = vpop.f32.mrf.mxu1 }
  0xf4   :  { %v222_v59 = vadd.f32 %v221_v57, %v1610_v35  ;;  %v287_v60 = vadd.f32 %v286_v58, %v1613_v36 }
  0xf6   :  { %1101 = vst [vmem:[%s2670_s3 + $0x4e0] sm:$0xff] %v222_v59  ;;  %v351_v61 = vpop.f32.mrf.mxu2  ;;  %v416_v62 = vpop.f32.mrf.mxu3  ;;  %1223 = vmatmul.msk.f32.gmra.mxu0 %vm91_vm1, %v1566_v29  ;;  %1240 = vmatmul.msk.f32.gmra.mxu1 %vm91_vm1, %v1566_v29 }
  0xf7   :  { %1102 = vst [vmem:[%s2670_s3 + $0x4e8] sm:$0xff] %v287_v60  ;;  %v352_v63 = vadd.f32 %v351_v61, %v1620_v39  ;;  %v417_v0 = vadd.f32 %v416_v62, %v1623_v40 }
  0xf9   :  { %1103 = vst [vmem:[%s2670_s3 + $0x4f0] sm:$0xff] %v352_v63 }
  0xfa   :  { %1104 = vst [vmem:[%s2670_s3 + $0x4f8] sm:$0xff] %v417_v0 }
  0xfb   :  { %1258 = vmatmul.msk.f32.gmra.mxu2 %vm91_vm1, %v1581_v32  ;;  %1275 = vmatmul.msk.f32.gmra.mxu3 %vm91_vm1, %v1581_v32  ;;  %v224_v1 = vpop.f32.mrf.mxu0  ;;  %v289_v2 = vpop.f32.mrf.mxu1 }
  0xfc   :  { %v225_v3 = vadd.f32 %v224_v1, %v1610_v35  ;;  %v290_v4 = vadd.f32 %v289_v2, %v1613_v36 }
  0xfe   :  { %1113 = vst [vmem:[%s2670_s3 + $0x540] sm:$0xff] %v225_v3  ;;  %v354_v6 = vpop.f32.mrf.mxu2  ;;  %v419_v7 = vpop.f32.mrf.mxu3  ;;  %1224 = vmatmul.msk.f32.gmra.mxu0 %vm91_vm1, %v1581_v32  ;;  %1241 = vmatmul.msk.f32.gmra.mxu1 %vm91_vm1, %v1581_v32 }
  0xff   :  { %1114 = vst [vmem:[%s2670_s3 + $0x548] sm:$0xff] %v290_v4  ;;  %v355_v8 = vadd.f32 %v354_v6, %v1620_v39  ;;  %v420_v9 = vadd.f32 %v419_v7, %v1623_v40 }
 0x101   :  { %1115 = vst [vmem:[%s2670_s3 + $0x550] sm:$0xff] %v355_v8 }
 0x102   :  { %1116 = vst [vmem:[%s2670_s3 + $0x558] sm:$0xff] %v420_v9 }
 0x103   :  { %1259 = vmatmul.msk.f32.gmra.mxu2 %vm91_vm1, %v1594_v33  ;;  %1276 = vmatmul.msk.f32.gmra.mxu3 %vm91_vm1, %v1594_v33  ;;  %v227_v10 = vpop.f32.mrf.mxu0  ;;  %v292_v11 = vpop.f32.mrf.mxu1 }
 0x104   :  { %v228_v12 = vadd.f32 %v227_v10, %v1610_v35  ;;  %v293_v13 = vadd.f32 %v292_v11, %v1613_v36 }
 0x106   :  { %1125 = vst [vmem:[%s2670_s3 + $0x5a0] sm:$0xff] %v228_v12  ;;  %v357_v14 = vpop.f32.mrf.mxu2  ;;  %v422_v27 = vpop.f32.mrf.mxu3  ;;  %1225 = vmatmul.msk.f32.gmra.mxu0 %vm91_vm1, %v1594_v33  ;;  %1242 = vmatmul.msk.f32.gmra.mxu1 %vm91_vm1, %v1594_v33 }
 0x107   :  { %1126 = vst [vmem:[%s2670_s3 + $0x5a8] sm:$0xff] %v293_v13  ;;  %v358_v35 = vadd.f32 %v357_v14, %v1620_v39  ;;  %v423_v36 = vadd.f32 %v422_v27, %v1623_v40  ;;  %v2016_v40 = vperm.slane %v1603_v34, 6 }
 0x109   :  { %1127 = vst [vmem:[%s2670_s3 + $0x5b0] sm:$0xff] %v358_v35 }
 0x10a   :  { %1128 = vst [vmem:[%s2670_s3 + $0x5b8] sm:$0xff] %v423_v36 }
 0x10b   :  { %1312 = vmatmul.msk.f32.vlgmr.msra.gmra.mxu2 %vm91_vm1, %v1384_v5  ;;  %1329 = vmatmul.msk.f32.vlgmr.msra.gmra.mxu3 %vm91_vm1, %v1384_v5  ;;  %v442_v33 = vpop.f32.mrf.mxu0  ;;  %v507_v39 = vpop.f32.mrf.mxu1 }
 0x10c   :  { %v443_v37 = vadd.f32 %v442_v33, %v2000_v28  ;;  %v508_v38 = vadd.f32 %v507_v39, %v2003_v30 }
 0x10e   :  { %949 = vst [vmem:[%s2670_s3 + $0x20] sm:$0xff] %v443_v37  ;;  %v572_v41 = vpop.f32.mrf.mxu2  ;;  %v637_v42 = vpop.f32.mrf.mxu3  ;;  %1278 = vmatmul.msk.f32.vlgmr.msra.gmra.mxu0 %vm91_vm1, %v1384_v5  ;;  %1295 = vmatmul.msk.f32.vlgmr.msra.gmra.mxu1 %vm91_vm1, %v1384_v5 }
 0x10f   :  { %950 = vst [vmem:[%s2670_s3 + $0x28] sm:$0xff] %v508_v38  ;;  %v573_v34 = vadd.f32 %v572_v41, %v2016_v40  ;;  %v638_v43 = vadd.f32 %v637_v42, %v2019_v31 }
 0x111   :  { %951 = vst [vmem:[%s2670_s3 + $0x30] sm:$0xff] %v573_v34 }
 0x112   :  { %952 = vst [vmem:[%s2670_s3 + $0x38] sm:$0xff] %v638_v43 }
 0x113   :  { %1313 = vmatmul.msk.f32.gmra.mxu2 %vm91_vm1, %v1408_v15  ;;  %1330 = vmatmul.msk.f32.gmra.mxu3 %vm91_vm1, %v1408_v15  ;;  %v445_v5 = vpop.f32.mrf.mxu0  ;;  %v510_v44 = vpop.f32.mrf.mxu1 }
 0x114   :  { %v446_v45 = vadd.f32 %v445_v5, %v2000_v28  ;;  %v511_v46 = vadd.f32 %v510_v44, %v2003_v30 }
 0x116   :  { %961 = vst [vmem:[%s2670_s3 + $0x80] sm:$0xff] %v446_v45  ;;  %v575_v47 = vpop.f32.mrf.mxu2  ;;  %v640_v48 = vpop.f32.mrf.mxu3  ;;  %1279 = vmatmul.msk.f32.gmra.mxu0 %vm91_vm1, %v1408_v15  ;;  %1296 = vmatmul.msk.f32.gmra.mxu1 %vm91_vm1, %v1408_v15 }
 0x117   :  { %962 = vst [vmem:[%s2670_s3 + $0x88] sm:$0xff] %v511_v46  ;;  %v576_v49 = vadd.f32 %v575_v47, %v2016_v40  ;;  %v641_v50 = vadd.f32 %v640_v48, %v2019_v31 }
 0x119   :  { %963 = vst [vmem:[%s2670_s3 + $0x90] sm:$0xff] %v576_v49 }
 0x11a   :  { %964 = vst [vmem:[%s2670_s3 + $0x98] sm:$0xff] %v641_v50 }
 0x11b   :  { %1314 = vmatmul.msk.f32.gmra.mxu2 %vm91_vm1, %v1421_v16  ;;  %1331 = vmatmul.msk.f32.gmra.mxu3 %vm91_vm1, %v1421_v16  ;;  %v448_v15 = vpop.f32.mrf.mxu0  ;;  %v513_v51 = vpop.f32.mrf.mxu1 }
 0x11c   :  { %v449_v52 = vadd.f32 %v448_v15, %v2000_v28  ;;  %v514_v53 = vadd.f32 %v513_v51, %v2003_v30 }
 0x11e   :  { %973 = vst [vmem:[%s2670_s3 + $0xe0] sm:$0xff] %v449_v52  ;;  %v578_v54 = vpop.f32.mrf.mxu2  ;;  %v643_v55 = vpop.f32.mrf.mxu3  ;;  %1280 = vmatmul.msk.f32.gmra.mxu0 %vm91_vm1, %v1421_v16  ;;  %1297 = vmatmul.msk.f32.gmra.mxu1 %vm91_vm1, %v1421_v16 }
 0x11f   :  { %974 = vst [vmem:[%s2670_s3 + $0xe8] sm:$0xff] %v514_v53  ;;  %v579_v56 = vadd.f32 %v578_v54, %v2016_v40  ;;  %v644_v57 = vadd.f32 %v643_v55, %v2019_v31 }
 0x121   :  { %975 = vst [vmem:[%s2670_s3 + $0xf0] sm:$0xff] %v579_v56 }
 0x122   :  { %976 = vst [vmem:[%s2670_s3 + $0xf8] sm:$0xff] %v644_v57 }
 0x123   :  { %1315 = vmatmul.msk.f32.gmra.mxu2 %vm91_vm1, %v1434_v17  ;;  %1332 = vmatmul.msk.f32.gmra.mxu3 %vm91_vm1, %v1434_v17  ;;  %v451_v16 = vpop.f32.mrf.mxu0  ;;  %v516_v58 = vpop.f32.mrf.mxu1 }
 0x124   :  { %v452_v59 = vadd.f32 %v451_v16, %v2000_v28  ;;  %v517_v60 = vadd.f32 %v516_v58, %v2003_v30 }
 0x126   :  { %985 = vst [vmem:[%s2670_s3 + $0x140] sm:$0xff] %v452_v59  ;;  %v581_v61 = vpop.f32.mrf.mxu2  ;;  %v646_v62 = vpop.f32.mrf.mxu3  ;;  %1281 = vmatmul.msk.f32.gmra.mxu0 %vm91_vm1, %v1434_v17  ;;  %1298 = vmatmul.msk.f32.gmra.mxu1 %vm91_vm1, %v1434_v17 }
 0x127   :  { %986 = vst [vmem:[%s2670_s3 + $0x148] sm:$0xff] %v517_v60  ;;  %v582_v63 = vadd.f32 %v581_v61, %v2016_v40  ;;  %v647_v0 = vadd.f32 %v646_v62, %v2019_v31 }
 0x129   :  { %987 = vst [vmem:[%s2670_s3 + $0x150] sm:$0xff] %v582_v63 }
 0x12a   :  { %988 = vst [vmem:[%s2670_s3 + $0x158] sm:$0xff] %v647_v0 }
 0x12b   :  { %1316 = vmatmul.msk.f32.gmra.mxu2 %vm91_vm1, %v1447_v18  ;;  %1333 = vmatmul.msk.f32.gmra.mxu3 %vm91_vm1, %v1447_v18  ;;  %v454_v17 = vpop.f32.mrf.mxu0  ;;  %v519_v1 = vpop.f32.mrf.mxu1 }
 0x12c   :  { %v455_v2 = vadd.f32 %v454_v17, %v2000_v28  ;;  %v520_v3 = vadd.f32 %v519_v1, %v2003_v30 }
 0x12e   :  { %997 = vst [vmem:[%s2670_s3 + $0x1a0] sm:$0xff] %v455_v2  ;;  %v584_v4 = vpop.f32.mrf.mxu2  ;;  %v649_v6 = vpop.f32.mrf.mxu3  ;;  %1282 = vmatmul.msk.f32.gmra.mxu0 %vm91_vm1, %v1447_v18  ;;  %1299 = vmatmul.msk.f32.gmra.mxu1 %vm91_vm1, %v1447_v18 }
 0x12f   :  { %998 = vst [vmem:[%s2670_s3 + $0x1a8] sm:$0xff] %v520_v3  ;;  %v585_v7 = vadd.f32 %v584_v4, %v2016_v40  ;;  %v650_v8 = vadd.f32 %v649_v6, %v2019_v31 }
 0x131   :  { %999 = vst [vmem:[%s2670_s3 + $0x1b0] sm:$0xff] %v585_v7 }
 0x132   :  { %1000 = vst [vmem:[%s2670_s3 + $0x1b8] sm:$0xff] %v650_v8 }
 0x133   :  { %1317 = vmatmul.msk.f32.gmra.mxu2 %vm91_vm1, %v1460_v19  ;;  %1334 = vmatmul.msk.f32.gmra.mxu3 %vm91_vm1, %v1460_v19  ;;  %v457_v18 = vpop.f32.mrf.mxu0  ;;  %v522_v9 = vpop.f32.mrf.mxu1 }
 0x134   :  { %v458_v10 = vadd.f32 %v457_v18, %v2000_v28  ;;  %v523_v11 = vadd.f32 %v522_v9, %v2003_v30 }
 0x136   :  { %1009 = vst [vmem:[%s2670_s3 + $0x200] sm:$0xff] %v458_v10  ;;  %v587_v12 = vpop.f32.mrf.mxu2  ;;  %v652_v13 = vpop.f32.mrf.mxu3  ;;  %1283 = vmatmul.msk.f32.gmra.mxu0 %vm91_vm1, %v1460_v19  ;;  %1300 = vmatmul.msk.f32.gmra.mxu1 %vm91_vm1, %v1460_v19 }
 0x137   :  { %1010 = vst [vmem:[%s2670_s3 + $0x208] sm:$0xff] %v523_v11  ;;  %v588_v14 = vadd.f32 %v587_v12, %v2016_v40  ;;  %v653_v27 = vadd.f32 %v652_v13, %v2019_v31 }
 0x139   :  { %1011 = vst [vmem:[%s2670_s3 + $0x210] sm:$0xff] %v588_v14 }
 0x13a   :  { %1012 = vst [vmem:[%s2670_s3 + $0x218] sm:$0xff] %v653_v27 }
 0x13b   :  { %1318 = vmatmul.msk.f32.gmra.mxu2 %vm91_vm1, %v1473_v20  ;;  %1335 = vmatmul.msk.f32.gmra.mxu3 %vm91_vm1, %v1473_v20  ;;  %v460_v19 = vpop.f32.mrf.mxu0  ;;  %v525_v35 = vpop.f32.mrf.mxu1 }
 0x13c   :  { %v461_v36 = vadd.f32 %v460_v19, %v2000_v28  ;;  %v526_v33 = vadd.f32 %v525_v35, %v2003_v30 }
 0x13e   :  { %1021 = vst [vmem:[%s2670_s3 + $0x260] sm:$0xff] %v461_v36  ;;  %v590_v39 = vpop.f32.mrf.mxu2  ;;  %v655_v37 = vpop.f32.mrf.mxu3  ;;  %1284 = vmatmul.msk.f32.gmra.mxu0 %vm91_vm1, %v1473_v20  ;;  %1301 = vmatmul.msk.f32.gmra.mxu1 %vm91_vm1, %v1473_v20 }
 0x13f   :  { %1022 = vst [vmem:[%s2670_s3 + $0x268] sm:$0xff] %v526_v33  ;;  %v591_v38 = vadd.f32 %v590_v39, %v2016_v40  ;;  %v656_v41 = vadd.f32 %v655_v37, %v2019_v31 }
 0x141   :  { %1023 = vst [vmem:[%s2670_s3 + $0x270] sm:$0xff] %v591_v38 }
 0x142   :  { %1024 = vst [vmem:[%s2670_s3 + $0x278] sm:$0xff] %v656_v41 }
 0x143   :  { %1319 = vmatmul.msk.f32.gmra.mxu2 %vm91_vm1, %v1486_v21  ;;  %1336 = vmatmul.msk.f32.gmra.mxu3 %vm91_vm1, %v1486_v21  ;;  %v463_v20 = vpop.f32.mrf.mxu0  ;;  %v528_v42 = vpop.f32.mrf.mxu1 }
 0x144   :  { %v464_v34 = vadd.f32 %v463_v20, %v2000_v28  ;;  %v529_v43 = vadd.f32 %v528_v42, %v2003_v30 }
 0x146   :  { %1033 = vst [vmem:[%s2670_s3 + $0x2c0] sm:$0xff] %v464_v34  ;;  %v593_v5 = vpop.f32.mrf.mxu2  ;;  %v658_v44 = vpop.f32.mrf.mxu3  ;;  %1285 = vmatmul.msk.f32.gmra.mxu0 %vm91_vm1, %v1486_v21  ;;  %1302 = vmatmul.msk.f32.gmra.mxu1 %vm91_vm1, %v1486_v21 }
 0x147   :  { %1034 = vst [vmem:[%s2670_s3 + $0x2c8] sm:$0xff] %v529_v43  ;;  %v594_v45 = vadd.f32 %v593_v5, %v2016_v40  ;;  %v659_v46 = vadd.f32 %v658_v44, %v2019_v31 }
 0x149   :  { %1035 = vst [vmem:[%s2670_s3 + $0x2d0] sm:$0xff] %v594_v45 }
 0x14a   :  { %1036 = vst [vmem:[%s2670_s3 + $0x2d8] sm:$0xff] %v659_v46 }
 0x14b   :  { %1320 = vmatmul.msk.f32.gmra.mxu2 %vm91_vm1, %v1499_v22  ;;  %1337 = vmatmul.msk.f32.gmra.mxu3 %vm91_vm1, %v1499_v22  ;;  %v466_v21 = vpop.f32.mrf.mxu0  ;;  %v531_v47 = vpop.f32.mrf.mxu1 }
 0x14c   :  { %v467_v48 = vadd.f32 %v466_v21, %v2000_v28  ;;  %v532_v49 = vadd.f32 %v531_v47, %v2003_v30  ;;  %v37_v47 = vld [vmem:[%s2669_s2 + $0x8] sm:$0xf] }
 0x14e   :  { %1045 = vst [vmem:[%s2670_s3 + $0x320] sm:$0xff] %v467_v48  ;;  %v596_v50 = vpop.f32.mrf.mxu2  ;;  %v661_v15 = vpop.f32.mrf.mxu3  ;;  %1286 = vmatmul.msk.f32.gmra.mxu0 %vm91_vm1, %v1499_v22  ;;  %1303 = vmatmul.msk.f32.gmra.mxu1 %vm91_vm1, %v1499_v22 }
 0x14f   :  { %1046 = vst [vmem:[%s2670_s3 + $0x328] sm:$0xff] %v532_v49  ;;  %v597_v51 = vadd.f32 %v596_v50, %v2016_v40  ;;  %v662_v52 = vadd.f32 %v661_v15, %v2019_v31  ;;  %v2397_v50 = vperm.slane %v37_v47, 0  ;;  %v2399_v15 = vperm.slane %v37_v47, 1 }
 0x151   :  { %1047 = vst [vmem:[%s2670_s3 + $0x330] sm:$0xff] %v597_v51 }
 0x152   :  { %1048 = vst [vmem:[%s2670_s3 + $0x338] sm:$0xff] %v662_v52 }
 0x153   :  { %1321 = vmatmul.msk.f32.gmra.mxu2 %vm91_vm1, %v1512_v23  ;;  %1338 = vmatmul.msk.f32.gmra.mxu3 %vm91_vm1, %v1512_v23  ;;  %v469_v22 = vpop.f32.mrf.mxu0  ;;  %v534_v53 = vpop.f32.mrf.mxu1 }
 0x154   :  { %v470_v54 = vadd.f32 %v469_v22, %v2000_v28  ;;  %v535_v55 = vadd.f32 %v534_v53, %v2003_v30  ;;  %v2407_v22 = vperm.slane %v37_v47, 2  ;;  %v2409_v53 = vperm.slane %v37_v47, 3 }
 0x156   :  { %1057 = vst [vmem:[%s2670_s3 + $0x380] sm:$0xff] %v470_v54  ;;  %v599_v56 = vpop.f32.mrf.mxu2  ;;  %v664_v57 = vpop.f32.mrf.mxu3  ;;  %1287 = vmatmul.msk.f32.gmra.mxu0 %vm91_vm1, %v1512_v23  ;;  %1304 = vmatmul.msk.f32.gmra.mxu1 %vm91_vm1, %v1512_v23 }
 0x157   :  { %1058 = vst [vmem:[%s2670_s3 + $0x388] sm:$0xff] %v535_v55  ;;  %v600_v16 = vadd.f32 %v599_v56, %v2016_v40  ;;  %v665_v58 = vadd.f32 %v664_v57, %v2019_v31 }
 0x159   :  { %1059 = vst [vmem:[%s2670_s3 + $0x390] sm:$0xff] %v600_v16 }
 0x15a   :  { %1060 = vst [vmem:[%s2670_s3 + $0x398] sm:$0xff] %v665_v58 }
 0x15b   :  { %1322 = vmatmul.msk.f32.gmra.mxu2 %vm91_vm1, %v1525_v24  ;;  %1339 = vmatmul.msk.f32.gmra.mxu3 %vm91_vm1, %v1525_v24  ;;  %v472_v23 = vpop.f32.mrf.mxu0  ;;  %v537_v59 = vpop.f32.mrf.mxu1 }
 0x15c   :  { %v473_v60 = vadd.f32 %v472_v23, %v2000_v28  ;;  %v538_v61 = vadd.f32 %v537_v59, %v2003_v30 }
 0x15e   :  { %1069 = vst [vmem:[%s2670_s3 + $0x3e0] sm:$0xff] %v473_v60  ;;  %v602_v62 = vpop.f32.mrf.mxu2  ;;  %v667_v63 = vpop.f32.mrf.mxu3  ;;  %1288 = vmatmul.msk.f32.gmra.mxu0 %vm91_vm1, %v1525_v24  ;;  %1305 = vmatmul.msk.f32.gmra.mxu1 %vm91_vm1, %v1525_v24 }
 0x15f   :  { %1070 = vst [vmem:[%s2670_s3 + $0x3e8] sm:$0xff] %v538_v61  ;;  %v603_v0 = vadd.f32 %v602_v62, %v2016_v40  ;;  %v668_v17 = vadd.f32 %v667_v63, %v2019_v31 }
 0x161   :  { %1071 = vst [vmem:[%s2670_s3 + $0x3f0] sm:$0xff] %v603_v0 }
 0x162   :  { %1072 = vst [vmem:[%s2670_s3 + $0x3f8] sm:$0xff] %v668_v17 }
 0x163   :  { %1323 = vmatmul.msk.f32.gmra.mxu2 %vm91_vm1, %v1538_v25  ;;  %1340 = vmatmul.msk.f32.gmra.mxu3 %vm91_vm1, %v1538_v25  ;;  %v475_v24 = vpop.f32.mrf.mxu0  ;;  %v540_v1 = vpop.f32.mrf.mxu1 }
 0x164   :  { %v476_v2 = vadd.f32 %v475_v24, %v2000_v28  ;;  %v541_v3 = vadd.f32 %v540_v1, %v2003_v30 }
 0x166   :  { %1081 = vst [vmem:[%s2670_s3 + $0x440] sm:$0xff] %v476_v2  ;;  %v605_v4 = vpop.f32.mrf.mxu2  ;;  %v670_v6 = vpop.f32.mrf.mxu3  ;;  %1289 = vmatmul.msk.f32.gmra.mxu0 %vm91_vm1, %v1538_v25  ;;  %1306 = vmatmul.msk.f32.gmra.mxu1 %vm91_vm1, %v1538_v25 }
 0x167   :  { %1082 = vst [vmem:[%s2670_s3 + $0x448] sm:$0xff] %v541_v3  ;;  %v606_v7 = vadd.f32 %v605_v4, %v2016_v40  ;;  %v671_v8 = vadd.f32 %v670_v6, %v2019_v31 }
 0x169   :  { %1083 = vst [vmem:[%s2670_s3 + $0x450] sm:$0xff] %v606_v7 }
 0x16a   :  { %1084 = vst [vmem:[%s2670_s3 + $0x458] sm:$0xff] %v671_v8 }
 0x16b   :  { %1324 = vmatmul.msk.f32.gmra.mxu2 %vm91_vm1, %v1551_v26  ;;  %1341 = vmatmul.msk.f32.gmra.mxu3 %vm91_vm1, %v1551_v26  ;;  %v478_v25 = vpop.f32.mrf.mxu0  ;;  %v543_v18 = vpop.f32.mrf.mxu1 }
 0x16c   :  { %v479_v9 = vadd.f32 %v478_v25, %v2000_v28  ;;  %v544_v10 = vadd.f32 %v543_v18, %v2003_v30 }
 0x16e   :  { %1093 = vst [vmem:[%s2670_s3 + $0x4a0] sm:$0xff] %v479_v9  ;;  %v608_v11 = vpop.f32.mrf.mxu2  ;;  %v673_v12 = vpop.f32.mrf.mxu3  ;;  %1290 = vmatmul.msk.f32.gmra.mxu0 %vm91_vm1, %v1551_v26  ;;  %1307 = vmatmul.msk.f32.gmra.mxu1 %vm91_vm1, %v1551_v26 }
 0x16f   :  { %1094 = vst [vmem:[%s2670_s3 + $0x4a8] sm:$0xff] %v544_v10  ;;  %v609_v13 = vadd.f32 %v608_v11, %v2016_v40  ;;  %v674_v14 = vadd.f32 %v673_v12, %v2019_v31 }
 0x171   :  { %1095 = vst [vmem:[%s2670_s3 + $0x4b0] sm:$0xff] %v609_v13 }
 0x172   :  { %1096 = vst [vmem:[%s2670_s3 + $0x4b8] sm:$0xff] %v674_v14 }
 0x173   :  { %1325 = vmatmul.msk.f32.gmra.mxu2 %vm91_vm1, %v1566_v29  ;;  %1342 = vmatmul.msk.f32.gmra.mxu3 %vm91_vm1, %v1566_v29  ;;  %v481_v26 = vpop.f32.mrf.mxu0  ;;  %v546_v27 = vpop.f32.mrf.mxu1 }
 0x174   :  { %v482_v19 = vadd.f32 %v481_v26, %v2000_v28  ;;  %v547_v35 = vadd.f32 %v546_v27, %v2003_v30 }
 0x176   :  { %1105 = vst [vmem:[%s2670_s3 + $0x500] sm:$0xff] %v482_v19  ;;  %v611_v36 = vpop.f32.mrf.mxu2  ;;  %v676_v33 = vpop.f32.mrf.mxu3  ;;  %1291 = vmatmul.msk.f32.gmra.mxu0 %vm91_vm1, %v1566_v29  ;;  %1308 = vmatmul.msk.f32.gmra.mxu1 %vm91_vm1, %v1566_v29 }
 0x177   :  { %1106 = vst [vmem:[%s2670_s3 + $0x508] sm:$0xff] %v547_v35  ;;  %v612_v39 = vadd.f32 %v611_v36, %v2016_v40  ;;  %v677_v37 = vadd.f32 %v676_v33, %v2019_v31 }
 0x179   :  { %1107 = vst [vmem:[%s2670_s3 + $0x510] sm:$0xff] %v612_v39 }
 0x17a   :  { %1108 = vst [vmem:[%s2670_s3 + $0x518] sm:$0xff] %v677_v37 }
 0x17b   :  { %1326 = vmatmul.msk.f32.gmra.mxu2 %vm91_vm1, %v1581_v32  ;;  %1343 = vmatmul.msk.f32.gmra.mxu3 %vm91_vm1, %v1581_v32  ;;  %v484_v29 = vpop.f32.mrf.mxu0  ;;  %v549_v38 = vpop.f32.mrf.mxu1 }
 0x17c   :  { %v485_v41 = vadd.f32 %v484_v29, %v2000_v28  ;;  %v550_v20 = vadd.f32 %v549_v38, %v2003_v30 }
 0x17e   :  { %1117 = vst [vmem:[%s2670_s3 + $0x560] sm:$0xff] %v485_v41  ;;  %v614_v42 = vpop.f32.mrf.mxu2  ;;  %v679_v34 = vpop.f32.mrf.mxu3  ;;  %1292 = vmatmul.msk.f32.gmra.mxu0 %vm91_vm1, %v1581_v32  ;;  %1309 = vmatmul.msk.f32.gmra.mxu1 %vm91_vm1, %v1581_v32  ;;  %v1345_v32 = vld [vmem:[%s2668_s0 + $0x78] sm:$0xff] }
 0x17f   :  { %1118 = vst [vmem:[%s2670_s3 + $0x568] sm:$0xff] %v550_v20  ;;  %v615_v43 = vadd.f32 %v614_v42, %v2016_v40  ;;  %v680_v5 = vadd.f32 %v679_v34, %v2019_v31 }
 0x181   :  { %1119 = vst [vmem:[%s2670_s3 + $0x570] sm:$0xff] %v615_v43 }
 0x182   :  { %1120 = vst [vmem:[%s2670_s3 + $0x578] sm:$0xff] %v680_v5 }
 0x183   :  { %1327 = vmatmul.msk.f32.gmra.mxu2 %vm91_vm1, %v1345_v32  ;;  %1344 = vmatmul.msk.f32.gmra.mxu3 %vm91_vm1, %v1345_v32  ;;  %v487_v44 = vpop.f32.mrf.mxu0  ;;  %v552_v45 = vpop.f32.mrf.mxu1 }
 0x184   :  { %v488_v46 = vadd.f32 %v487_v44, %v2000_v28  ;;  %v553_v21 = vadd.f32 %v552_v45, %v2003_v30 }
 0x186   :  { %1129 = vst [vmem:[%s2670_s3 + $0x5c0] sm:$0xff] %v488_v46  ;;  %v617_v48 = vpop.f32.mrf.mxu2  ;;  %v682_v49 = vpop.f32.mrf.mxu3  ;;  %1293 = vmatmul.msk.f32.gmra.mxu0 %vm91_vm1, %v1345_v32  ;;  %1310 = vmatmul.msk.f32.gmra.mxu1 %vm91_vm1, %v1345_v32 }
 0x187   :  { %1130 = vst [vmem:[%s2670_s3 + $0x5c8] sm:$0xff] %v553_v21  ;;  %v618_v28 = vadd.f32 %v617_v48, %v2016_v40  ;;  %v683_v30 = vadd.f32 %v682_v49, %v2019_v31 }
 0x189   :  { %1131 = vst [vmem:[%s2670_s3 + $0x5d0] sm:$0xff] %v618_v28 }
 0x18a   :  { %1132 = vst [vmem:[%s2670_s3 + $0x5d8] sm:$0xff] %v683_v30 }
 0x18b   :  { %v702_v51 = vpop.f32.mrf.mxu0  ;;  %v767_v52 = vpop.f32.mrf.mxu1 }
 0x18c   :  { %v703_v40 = vadd.f32 %v702_v51, %v2397_v50  ;;  %v768_v31 = vadd.f32 %v767_v52, %v2399_v15 }
 0x18e   :  { %953 = vst [vmem:[%s2670_s3 + $0x40] sm:$0xff] %v703_v40  ;;  %v832_v54 = vpop.f32.mrf.mxu2  ;;  %v897_v55 = vpop.f32.mrf.mxu3 }
 0x18f   :  { %954 = vst [vmem:[%s2670_s3 + $0x48] sm:$0xff] %v768_v31  ;;  %v833_v56 = vadd.f32 %v832_v54, %v2407_v22  ;;  %v898_v57 = vadd.f32 %v897_v55, %v2409_v53 }
 0x191   :  { %955 = vst [vmem:[%s2670_s3 + $0x50] sm:$0xff] %v833_v56 }
 0x192   :  { %956 = vst [vmem:[%s2670_s3 + $0x58] sm:$0xff] %v898_v57 }
 0x193   :  { %v705_v16 = vpop.f32.mrf.mxu0  ;;  %v770_v58 = vpop.f32.mrf.mxu1 }
 0x194   :  { %v706_v23 = vadd.f32 %v705_v16, %v2397_v50  ;;  %v771_v59 = vadd.f32 %v770_v58, %v2399_v15 }
 0x196   :  { %965 = vst [vmem:[%s2670_s3 + $0xa0] sm:$0xff] %v706_v23  ;;  %v835_v60 = vpop.f32.mrf.mxu2  ;;  %v900_v61 = vpop.f32.mrf.mxu3 }
 0x197   :  { %966 = vst [vmem:[%s2670_s3 + $0xa8] sm:$0xff] %v771_v59  ;;  %v836_v62 = vadd.f32 %v835_v60, %v2407_v22  ;;  %v901_v63 = vadd.f32 %v900_v61, %v2409_v53 }
 0x199   :  { %967 = vst [vmem:[%s2670_s3 + $0xb0] sm:$0xff] %v836_v62 }
 0x19a   :  { %968 = vst [vmem:[%s2670_s3 + $0xb8] sm:$0xff] %v901_v63 }
 0x19b   :  { %v708_v0 = vpop.f32.mrf.mxu0  ;;  %v773_v17 = vpop.f32.mrf.mxu1 }
 0x19c   :  { %v709_v24 = vadd.f32 %v708_v0, %v2397_v50  ;;  %v774_v1 = vadd.f32 %v773_v17, %v2399_v15 }
 0x19e   :  { %977 = vst [vmem:[%s2670_s3 + $0x100] sm:$0xff] %v709_v24  ;;  %v838_v2 = vpop.f32.mrf.mxu2  ;;  %v903_v3 = vpop.f32.mrf.mxu3 }
 0x19f   :  { %978 = vst [vmem:[%s2670_s3 + $0x108] sm:$0xff] %v774_v1  ;;  %v839_v4 = vadd.f32 %v838_v2, %v2407_v22  ;;  %v904_v6 = vadd.f32 %v903_v3, %v2409_v53 }
 0x1a1   :  { %979 = vst [vmem:[%s2670_s3 + $0x110] sm:$0xff] %v839_v4 }
 0x1a2   :  { %980 = vst [vmem:[%s2670_s3 + $0x118] sm:$0xff] %v904_v6 }
 0x1a3   :  { %v711_v7 = vpop.f32.mrf.mxu0  ;;  %v776_v8 = vpop.f32.mrf.mxu1 }
 0x1a4   :  { %v712_v25 = vadd.f32 %v711_v7, %v2397_v50  ;;  %v777_v18 = vadd.f32 %v776_v8, %v2399_v15 }
 0x1a6   :  { %989 = vst [vmem:[%s2670_s3 + $0x160] sm:$0xff] %v712_v25  ;;  %v841_v9 = vpop.f32.mrf.mxu2  ;;  %v906_v10 = vpop.f32.mrf.mxu3 }
 0x1a7   :  { %990 = vst [vmem:[%s2670_s3 + $0x168] sm:$0xff] %v777_v18  ;;  %v842_v11 = vadd.f32 %v841_v9, %v2407_v22  ;;  %v907_v12 = vadd.f32 %v906_v10, %v2409_v53 }
 0x1a9   :  { %991 = vst [vmem:[%s2670_s3 + $0x170] sm:$0xff] %v842_v11 }
 0x1aa   :  { %992 = vst [vmem:[%s2670_s3 + $0x178] sm:$0xff] %v907_v12 }
 0x1ab   :  { %v714_v13 = vpop.f32.mrf.mxu0  ;;  %v779_v14 = vpop.f32.mrf.mxu1 }
 0x1ac   :  { %v715_v26 = vadd.f32 %v714_v13, %v2397_v50  ;;  %v780_v27 = vadd.f32 %v779_v14, %v2399_v15 }
 0x1ae   :  { %1001 = vst [vmem:[%s2670_s3 + $0x1c0] sm:$0xff] %v715_v26  ;;  %v844_v19 = vpop.f32.mrf.mxu2  ;;  %v909_v35 = vpop.f32.mrf.mxu3 }
 0x1af   :  { %1002 = vst [vmem:[%s2670_s3 + $0x1c8] sm:$0xff] %v780_v27  ;;  %v845_v36 = vadd.f32 %v844_v19, %v2407_v22  ;;  %v910_v33 = vadd.f32 %v909_v35, %v2409_v53 }
 0x1b1   :  { %1003 = vst [vmem:[%s2670_s3 + $0x1d0] sm:$0xff] %v845_v36 }
 0x1b2   :  { %1004 = vst [vmem:[%s2670_s3 + $0x1d8] sm:$0xff] %v910_v33 }
 0x1b3   :  { %v717_v39 = vpop.f32.mrf.mxu0  ;;  %v782_v37 = vpop.f32.mrf.mxu1 }
 0x1b4   :  { %v718_v29 = vadd.f32 %v717_v39, %v2397_v50  ;;  %v783_v38 = vadd.f32 %v782_v37, %v2399_v15 }
 0x1b6   :  { %1013 = vst [vmem:[%s2670_s3 + $0x220] sm:$0xff] %v718_v29  ;;  %v847_v41 = vpop.f32.mrf.mxu2  ;;  %v912_v20 = vpop.f32.mrf.mxu3 }
 0x1b7   :  { %1014 = vst [vmem:[%s2670_s3 + $0x228] sm:$0xff] %v783_v38  ;;  %v848_v42 = vadd.f32 %v847_v41, %v2407_v22  ;;  %v913_v34 = vadd.f32 %v912_v20, %v2409_v53 }
 0x1b9   :  { %1015 = vst [vmem:[%s2670_s3 + $0x230] sm:$0xff] %v848_v42 }
 0x1ba   :  { %1016 = vst [vmem:[%s2670_s3 + $0x238] sm:$0xff] %v913_v34 }
 0x1bb   :  { %v720_v43 = vpop.f32.mrf.mxu0  ;;  %v785_v5 = vpop.f32.mrf.mxu1 }
 0x1bc   :  { %v721_v32 = vadd.f32 %v720_v43, %v2397_v50  ;;  %v786_v44 = vadd.f32 %v785_v5, %v2399_v15 }
 0x1be   :  { %1025 = vst [vmem:[%s2670_s3 + $0x280] sm:$0xff] %v721_v32  ;;  %v850_v45 = vpop.f32.mrf.mxu2  ;;  %v915_v46 = vpop.f32.mrf.mxu3 }
 0x1bf   :  { %1026 = vst [vmem:[%s2670_s3 + $0x288] sm:$0xff] %v786_v44  ;;  %v851_v21 = vadd.f32 %v850_v45, %v2407_v22  ;;  %v916_v47 = vadd.f32 %v915_v46, %v2409_v53 }
 0x1c1   :  { %1027 = vst [vmem:[%s2670_s3 + $0x290] sm:$0xff] %v851_v21 }
 0x1c2   :  { %1028 = vst [vmem:[%s2670_s3 + $0x298] sm:$0xff] %v916_v47 }
 0x1c3   :  { %v723_v48 = vpop.f32.mrf.mxu0  ;;  %v788_v49 = vpop.f32.mrf.mxu1 }
 0x1c4   :  { %v724_v28 = vadd.f32 %v723_v48, %v2397_v50  ;;  %v789_v30 = vadd.f32 %v788_v49, %v2399_v15 }
 0x1c6   :  { %1037 = vst [vmem:[%s2670_s3 + $0x2e0] sm:$0xff] %v724_v28  ;;  %v853_v51 = vpop.f32.mrf.mxu2  ;;  %v918_v52 = vpop.f32.mrf.mxu3 }
 0x1c7   :  { %1038 = vst [vmem:[%s2670_s3 + $0x2e8] sm:$0xff] %v789_v30  ;;  %v854_v40 = vadd.f32 %v853_v51, %v2407_v22  ;;  %v919_v31 = vadd.f32 %v918_v52, %v2409_v53 }
 0x1c9   :  { %1039 = vst [vmem:[%s2670_s3 + $0x2f0] sm:$0xff] %v854_v40 }
 0x1ca   :  { %1040 = vst [vmem:[%s2670_s3 + $0x2f8] sm:$0xff] %v919_v31 }
 0x1cb   :  { %v726_v54 = vpop.f32.mrf.mxu0  ;;  %v791_v55 = vpop.f32.mrf.mxu1 }
 0x1cc   :  { %v727_v56 = vadd.f32 %v726_v54, %v2397_v50  ;;  %v792_v57 = vadd.f32 %v791_v55, %v2399_v15 }
 0x1ce   :  { %1049 = vst [vmem:[%s2670_s3 + $0x340] sm:$0xff] %v727_v56  ;;  %v856_v16 = vpop.f32.mrf.mxu2  ;;  %v921_v58 = vpop.f32.mrf.mxu3 }
 0x1cf   :  { %1050 = vst [vmem:[%s2670_s3 + $0x348] sm:$0xff] %v792_v57  ;;  %v857_v23 = vadd.f32 %v856_v16, %v2407_v22  ;;  %v922_v59 = vadd.f32 %v921_v58, %v2409_v53 }
 0x1d1   :  { %1051 = vst [vmem:[%s2670_s3 + $0x350] sm:$0xff] %v857_v23 }
 0x1d2   :  { %1052 = vst [vmem:[%s2670_s3 + $0x358] sm:$0xff] %v922_v59 }
 0x1d3   :  { %v729_v60 = vpop.f32.mrf.mxu0  ;;  %v794_v61 = vpop.f32.mrf.mxu1 }
 0x1d4   :  { %v730_v62 = vadd.f32 %v729_v60, %v2397_v50  ;;  %v795_v63 = vadd.f32 %v794_v61, %v2399_v15 }
 0x1d6   :  { %1061 = vst [vmem:[%s2670_s3 + $0x3a0] sm:$0xff] %v730_v62  ;;  %v859_v0 = vpop.f32.mrf.mxu2  ;;  %v924_v17 = vpop.f32.mrf.mxu3 }
 0x1d7   :  { %1062 = vst [vmem:[%s2670_s3 + $0x3a8] sm:$0xff] %v795_v63  ;;  %v860_v24 = vadd.f32 %v859_v0, %v2407_v22  ;;  %v925_v1 = vadd.f32 %v924_v17, %v2409_v53 }
 0x1d9   :  { %1063 = vst [vmem:[%s2670_s3 + $0x3b0] sm:$0xff] %v860_v24 }
 0x1da   :  { %1064 = vst [vmem:[%s2670_s3 + $0x3b8] sm:$0xff] %v925_v1 }
 0x1db   :  { %v732_v2 = vpop.f32.mrf.mxu0  ;;  %v797_v3 = vpop.f32.mrf.mxu1 }
 0x1dc   :  { %v733_v4 = vadd.f32 %v732_v2, %v2397_v50  ;;  %v798_v6 = vadd.f32 %v797_v3, %v2399_v15 }
 0x1de   :  { %1073 = vst [vmem:[%s2670_s3 + $0x400] sm:$0xff] %v733_v4  ;;  %v862_v7 = vpop.f32.mrf.mxu2  ;;  %v927_v8 = vpop.f32.mrf.mxu3 }
 0x1df   :  { %1074 = vst [vmem:[%s2670_s3 + $0x408] sm:$0xff] %v798_v6  ;;  %v863_v25 = vadd.f32 %v862_v7, %v2407_v22  ;;  %v928_v18 = vadd.f32 %v927_v8, %v2409_v53 }
 0x1e1   :  { %1075 = vst [vmem:[%s2670_s3 + $0x410] sm:$0xff] %v863_v25 }
 0x1e2   :  { %1076 = vst [vmem:[%s2670_s3 + $0x418] sm:$0xff] %v928_v18 }
 0x1e3   :  { %v735_v9 = vpop.f32.mrf.mxu0  ;;  %v800_v10 = vpop.f32.mrf.mxu1 }
 0x1e4   :  { %v736_v11 = vadd.f32 %v735_v9, %v2397_v50  ;;  %v801_v12 = vadd.f32 %v800_v10, %v2399_v15 }
 0x1e6   :  { %1085 = vst [vmem:[%s2670_s3 + $0x460] sm:$0xff] %v736_v11  ;;  %v865_v13 = vpop.f32.mrf.mxu2  ;;  %v930_v14 = vpop.f32.mrf.mxu3 }
 0x1e7   :  { %1086 = vst [vmem:[%s2670_s3 + $0x468] sm:$0xff] %v801_v12  ;;  %v866_v26 = vadd.f32 %v865_v13, %v2407_v22  ;;  %v931_v27 = vadd.f32 %v930_v14, %v2409_v53 }
 0x1e9   :  { %1087 = vst [vmem:[%s2670_s3 + $0x470] sm:$0xff] %v866_v26 }
 0x1ea   :  { %1088 = vst [vmem:[%s2670_s3 + $0x478] sm:$0xff] %v931_v27 }
 0x1eb   :  { %v738_v19 = vpop.f32.mrf.mxu0  ;;  %v803_v35 = vpop.f32.mrf.mxu1 }
 0x1ec   :  { %v739_v36 = vadd.f32 %v738_v19, %v2397_v50  ;;  %v804_v33 = vadd.f32 %v803_v35, %v2399_v15 }
 0x1ee   :  { %1097 = vst [vmem:[%s2670_s3 + $0x4c0] sm:$0xff] %v739_v36  ;;  %v868_v39 = vpop.f32.mrf.mxu2  ;;  %v933_v37 = vpop.f32.mrf.mxu3 }
 0x1ef   :  { %1098 = vst [vmem:[%s2670_s3 + $0x4c8] sm:$0xff] %v804_v33  ;;  %v869_v29 = vadd.f32 %v868_v39, %v2407_v22  ;;  %v934_v38 = vadd.f32 %v933_v37, %v2409_v53 }
 0x1f1   :  { %1099 = vst [vmem:[%s2670_s3 + $0x4d0] sm:$0xff] %v869_v29 }
 0x1f2   :  { %1100 = vst [vmem:[%s2670_s3 + $0x4d8] sm:$0xff] %v934_v38 }
 0x1f3   :  { %v741_v41 = vpop.f32.mrf.mxu0  ;;  %v806_v20 = vpop.f32.mrf.mxu1 }
 0x1f4   :  { %v742_v42 = vadd.f32 %v741_v41, %v2397_v50  ;;  %v807_v34 = vadd.f32 %v806_v20, %v2399_v15 }
 0x1f6   :  { %1109 = vst [vmem:[%s2670_s3 + $0x520] sm:$0xff] %v742_v42  ;;  %v871_v43 = vpop.f32.mrf.mxu2  ;;  %v936_v5 = vpop.f32.mrf.mxu3 }
 0x1f7   :  { %1110 = vst [vmem:[%s2670_s3 + $0x528] sm:$0xff] %v807_v34  ;;  %v872_v32 = vadd.f32 %v871_v43, %v2407_v22  ;;  %v937_v44 = vadd.f32 %v936_v5, %v2409_v53 }
 0x1f9   :  { %1111 = vst [vmem:[%s2670_s3 + $0x530] sm:$0xff] %v872_v32 }
 0x1fa   :  { %1112 = vst [vmem:[%s2670_s3 + $0x538] sm:$0xff] %v937_v44 }
 0x1fb   :  { %v744_v45 = vpop.f32.mrf.mxu0  ;;  %v809_v46 = vpop.f32.mrf.mxu1 }
 0x1fc   :  { %v745_v21 = vadd.f32 %v744_v45, %v2397_v50  ;;  %v810_v47 = vadd.f32 %v809_v46, %v2399_v15 }
 0x1fe   :  { %1121 = vst [vmem:[%s2670_s3 + $0x580] sm:$0xff] %v745_v21  ;;  %v874_v48 = vpop.f32.mrf.mxu2  ;;  %v939_v49 = vpop.f32.mrf.mxu3 }
 0x1ff   :  { %1122 = vst [vmem:[%s2670_s3 + $0x588] sm:$0xff] %v810_v47  ;;  %v875_v28 = vadd.f32 %v874_v48, %v2407_v22  ;;  %v940_v30 = vadd.f32 %v939_v49, %v2409_v53 }
 0x201   :  { %1123 = vst [vmem:[%s2670_s3 + $0x590] sm:$0xff] %v875_v28 }
 0x202   :  { %1124 = vst [vmem:[%s2670_s3 + $0x598] sm:$0xff] %v940_v30 }
 0x203   :  { %v747_v51 = vpop.f32.mrf.mxu0  ;;  %v812_v52 = vpop.f32.mrf.mxu1 }
 0x204   :  { %v748_v40 = vadd.f32 %v747_v51, %v2397_v50  ;;  %v813_v31 = vadd.f32 %v812_v52, %v2399_v15 }
 0x206   :  { %1133 = vst [vmem:[%s2670_s3 + $0x5e0] sm:$0xff] %v748_v40  ;;  %v877_v54 = vpop.f32.mrf.mxu2  ;;  %v942_v55 = vpop.f32.mrf.mxu3 }
 0x207   :  { %1134 = vst [vmem:[%s2670_s3 + $0x5e8] sm:$0xff] %v813_v31  ;;  %v878_v56 = vadd.f32 %v877_v54, %v2407_v22  ;;  %v943_v57 = vadd.f32 %v942_v55, %v2409_v53 }
 0x209   :  { %1135 = vst [vmem:[%s2670_s3 + $0x5f0] sm:$0xff] %v878_v56 }
 0x20a   :  { %1136 = vst [vmem:[%s2670_s3 + $0x5f8] sm:$0xff] %v943_v57 }

</bundles_post_ra>
